<compile_context>
chip_gen: v7x
topology: tpu7x:2x2x1
jax: 0.10.0
libtpu: 0.0.40
codegen_flags: <defaults>
</compile_context>

<pallas_src>
import functools
import math

import jax
import jax.numpy as jnp
import numpy as np
from jax import lax
from jax.experimental import pallas as pl
from jax.experimental.pallas import tpu as pltpu

_INV_SQRT2 = 1.0 / math.sqrt(2.0)
_SQRT_2_OVER_PI = math.sqrt(2.0 / math.pi)


def _gelu(v, approximate):
    if approximate:
        # tanh approximation: lowers to the EUP (own bundle slot), overlaps MXU/VPU work.
        return 0.5 * v * (1.0 + jnp.tanh(_SQRT_2_OVER_PI * (v + 0.044715 * (v * v * v))))
    # nn.GELU default: exact erf-based GELU.
    return 0.5 * v * (1.0 + lax.erf(v * _INV_SQRT2))


def _conv_over_f(pad_ref, w_ref, k, f, tn, c, im2col):
    """Conv over the F axis from a padded bf16 scratch; f32 accumulation.

    im2col=True : one matmul, contraction = K*C (w_ref is (K*C, Cout)).
    im2col=False: K accumulated matmuls (w_ref is (K, C, Cout)) -- no taps copy traffic.
    """
    if im2col:
        taps = jnp.concatenate([pad_ref[dk:dk + f] for dk in range(k)], axis=-1)
        return jnp.dot(taps.reshape(f * tn, k * c), w_ref[...],
                       preferred_element_type=jnp.float32)
    acc = jnp.dot(pad_ref[0:f].reshape(f * tn, c), w_ref[0],
                  preferred_element_type=jnp.float32)
    for dk in range(1, k):
        acc = acc + jnp.dot(pad_ref[dk:dk + f].reshape(f * tn, c), w_ref[dk],
                            preferred_element_type=jnp.float32)
    return acc


def _resblock_kernel(x_ref,                       # (1, F, TN, Cin)  bf16
                     vec_ref,                     # (8, Cmax) f32: [s1, t1, b1_folded, bias_out]
                     w1_ref,                      # (K*Cin, Cout) or (K, Cin, Cout) bf16
                     w2_ref,                      # (K*Cout, Cout) or (K, Cout, Cout) bf16
                     ws_ref,                      # (Cin, Cout) bf16 (1x1 shortcut, pool-folded)
                     o_ref,                       # (1, F//2, TN, Cout) f32
                     pad1_ref, pad2_ref,          # scratch bf16: (F+2P, TN, Cin), (F+2P, TN, Cout)
                     *, k, im2col1, im2col2, approx_gelu):
    x16 = x_ref[0]                                # (F, TN, Cin) bf16
    F_, TN, Cin = x16.shape
    Cout = o_ref.shape[3]
    P = k // 2

    s1 = vec_ref[0:1, :Cin]                       # BN1 folded scale/shift
    t1 = vec_ref[1:2, :Cin]
    b1 = vec_ref[2:3, :Cout]                      # conv1 bias with BN2 scale/shift folded in
    bo = vec_ref[3:4, :Cout]                      # merged conv2 + shortcut bias (pool-folded)

    # ---- zero only the halo rows of the pad scratches (cheap: 2*P rows each).
    #      Done every grid step so per-core scratch is always valid under megacore.
    if P > 0:
        z1 = jnp.zeros((P, TN, Cin), pad1_ref.dtype)
        pad1_ref[:P] = z1
        pad1_ref[P + F_:] = z1
        z2 = jnp.zeros((P, TN, Cout), pad2_ref.dtype)
        pad2_ref[:P] = z2
        pad2_ref[P + F_:] = z2

    # ---- BN1 (eval affine) + GELU, stored bf16 into pad1 interior ----
    xf = x16.astype(jnp.float32)
    h1 = _gelu(xf * s1 + t1, approx_gelu)                       # (F, TN, Cin) f32
    pad1_ref[P:P + F_] = h1.astype(pad1_ref.dtype)

    # ---- Conv1 (BN2 scale pre-folded into columns) + folded bias, then GELU ----
    a1 = _conv_over_f(pad1_ref, w1_ref, k, F_, TN, Cin, im2col1) + b1
    h2 = _gelu(a1, approx_gelu)                                 # (F*TN, Cout) f32
    pad2_ref[P:P + F_] = h2.reshape(F_, TN, Cout).astype(pad2_ref.dtype)

    # ---- Conv2 (0.5 pool factor pre-folded, bias merged into bo) ----
    a2 = _conv_over_f(pad2_ref, w2_ref, k, F_, TN, Cout, im2col2)

    # ---- shortcut: 1x1 conv (bf16 operands, f32 accumulation, pool factor pre-folded) ----
    sc = jnp.dot(x16.reshape(F_ * TN, Cin), ws_ref[...],
                 preferred_element_type=jnp.float32)

    # ---- residual add + avg_pool2d((2,1)): sum adjacent F rows (0.5 already folded) ----
    tot = (a2 + sc).reshape(F_ // 2, 2, TN, Cout)
    o_ref[0] = (tot[:, 0] + tot[:, 1] + bo).astype(o_ref.dtype)


def _vmem_config():
    """(tile-selection budget, vmem_limit_bytes); generation aware (per TensorCore)."""
    try:
        kind = jax.devices()[0].device_kind.lower()
    except Exception:
        kind = ""
    cap = None
    try:
        cap = int(pltpu.get_tpu_info().vmem_capacity_bytes)
    except Exception:
        cap = None
    if "v7" in kind:                              # v7x: 64 MiB per TensorCore
        return 23 << 20, 46 << 20
    big_vmem = (cap is not None and cap > (64 << 20)) or (
        cap is None and any(t in kind for t in ("v5", "v6")))
    if big_vmem:                                  # v5e / v6e: 128 MiB per core
        return 52 << 20, 96 << 20
    return 23 << 20, 46 << 20                     # unknown hardware: conservative


def _choose_tile_n(n, b, f, cin, cout, k, budget_bytes, im2col1, im2col2):
    """Largest N-tile (divisor of n; multiple of 16 unless == n) fitting the VMEM budget,
    preferring tiles that leave the grid with >=4 (else >=2) steps so both v7x cores work."""
    p = k // 2
    cmax = max(cin, cout)

    def footprint(tn):
        bts = 2 * f * tn * cin * 2                         # double-buffered bf16 input
        bts += 2 * (f // 2) * tn * cout * 4                # double-buffered f32 output
        bts += (f + 2 * p) * tn * (cin + cout) * 2         # bf16 pad scratches
        if im2col1:
            bts += k * f * tn * cin * 2                    # taps1 (bf16)
        if im2col2:
            bts += k * f * tn * cout * 2                   # taps2 (bf16)
        bts += f * tn * cin * 4                            # h1 f32 temporary
        bts += 3 * f * tn * cout * 4                       # a1/a2/sc f32 temporaries
        bts += 2 * 2 * (k * cin * cout + k * cout * cout + cin * cout)  # bf16 weights (x2 buf)
        bts += 2 * 8 * cmax * 4                            # affine/bias slab (x2 buf)
        return bts

    cands = sorted({t for t in range(16, n + 1, 16) if n % t == 0} | {n}, reverse=True)
    fitting = [t for t in cands if footprint(t) <= budget_bytes] or [cands[-1]]
    for min_steps in (4, 2, 1):
        ok = [t for t in fitting if b * (n // t) >= min_steps]
        if ok:
            return ok[0]
    return fitting[0]


def _fold_params(params):
    """Fold BN2 into conv1 and the avg-pool 0.5 / biases into conv2 + shortcut (f32)."""
    s1 = params["s1"].reshape(-1)
    t1 = params["t1"].reshape(-1)
    s2 = params["s2"].reshape(-1)
    t2 = params["t2"].reshape(-1)
    b1 = params["b1"].reshape(-1)
    b2 = params["b2"].reshape(-1)
    bs = params["bs"].reshape(-1)
    w1f = params["w1"] * s2[None, None, :]        # BN2 scale into conv1 output columns
    b1f = b1 * s2 + t2                            # BN2 shift + conv1 bias
    w2f = 0.5 * params["w2"]                      # avg-pool 0.5 folded
    wsf = 0.5 * params["ws"]
    bo = b2 + bs                                  # merged output bias (0.5 * 2 rows = 1)
    return s1, t1, w1f, b1f, w2f, wsf, bo


def resblock_pallas(x_nchw, params, *, tile_n=None, conv_mode="auto",
                    approx_gelu=True, vmem_limit_bytes=None):
    """x_nchw: [B, Cin, F, N] float32 -> [B, Cout, F//2, N] float32."""
    B, Cin, F_, N_ = x_nchw.shape
    w1 = params["w1"]                             # (K, Cin, Cout) f32
    K = w1.shape[0]
    Cout = w1.shape[2]
    assert K % 2 == 1, "only odd kernel sizes supported (output F preserved by conv)"
    assert F_ % 2 == 0, "F must be even for the (2,1) avg-pool"
    P = K // 2

    # im2col (lane-filling K*C contraction) only pays off when C is lane-sparse (<128);
    # otherwise accumulate K matmuls and skip the taps copy traffic entirely.
    im2col1 = conv_mode == "im2col" or (conv_mode == "auto" and Cin < 128)
    im2col2 = conv_mode == "im2col" or (conv_mode == "auto" and Cout < 128)

    tile_budget, default_limit = _vmem_config()
    if vmem_limit_bytes is None:
        vmem_limit_bytes = default_limit

    TN = tile_n if tile_n is not None else _choose_tile_n(
        N_, B, F_, Cin, Cout, K, tile_budget, im2col1, im2col2)
    assert N_ % TN == 0 and (TN == N_ or TN % 16 == 0), (N_, TN)

    # Pre-fold constants + pre-format weights once (bf16 for the MXU).
    s1, t1, w1f, b1f, w2f, wsf, bo = _fold_params(params)
    cmax = max(Cin, Cout)
    vec = jnp.zeros((8, cmax), jnp.float32)
    vec = vec.at[0, :Cin].set(s1).at[1, :Cin].set(t1)
    vec = vec.at[2, :Cout].set(b1f).at[3, :Cout].set(bo)

    if im2col1:
        w1_dev = jnp.asarray(jnp.reshape(w1f, (K * Cin, Cout)), jnp.bfloat16)
        w1_spec = pl.BlockSpec((K * Cin, Cout), lambda b, n: (0, 0))
    else:
        w1_dev = jnp.asarray(w1f, jnp.bfloat16)
        w1_spec = pl.BlockSpec((K, Cin, Cout), lambda b, n: (0, 0, 0))
    if im2col2:
        w2_dev = jnp.asarray(jnp.reshape(w2f, (K * Cout, Cout)), jnp.bfloat16)
        w2_spec = pl.BlockSpec((K * Cout, Cout), lambda b, n: (0, 0))
    else:
        w2_dev = jnp.asarray(w2f, jnp.bfloat16)
        w2_spec = pl.BlockSpec((K, Cout, Cout), lambda b, n: (0, 0, 0))
    ws_dev = jnp.asarray(wsf, jnp.bfloat16)

    # Channels-last + bf16 activations (halves the dominant HBM read).
    x_bfnc = jnp.transpose(x_nchw, (0, 2, 3, 1)).astype(jnp.bfloat16)   # (B, F, N, Cin)

    kernel = functools.partial(_resblock_kernel, k=K,
                               im2col1=im2col1, im2col2=im2col2,
                               approx_gelu=approx_gelu)

    out = pl.pallas_call(
        kernel,
        out_shape=jax.ShapeDtypeStruct((B, F_ // 2, N_, Cout), jnp.float32),
        grid_spec=pltpu.PrefetchScalarGridSpec(
            num_scalar_prefetch=0,
            grid=(B, N_ // TN),
            in_specs=[
                pl.BlockSpec((1, F_, TN, Cin), lambda b, n: (b, 0, n, 0)),
                pl.BlockSpec((8, cmax), lambda b, n: (0, 0)),
                w1_spec,
                w2_spec,
                pl.BlockSpec((Cin, Cout), lambda b, n: (0, 0)),
            ],
            out_specs=pl.BlockSpec((1, F_ // 2, TN, Cout), lambda b, n: (b, 0, n, 0)),
            scratch_shapes=[
                pltpu.VMEM((F_ + 2 * P, TN, Cin), jnp.bfloat16),
                pltpu.VMEM((F_ + 2 * P, TN, Cout), jnp.bfloat16),
            ],
        ),
        compiler_params=pltpu.CompilerParams(
            dimension_semantics=("parallel", "parallel"),
            vmem_limit_bytes=int(vmem_limit_bytes)),
    )(x_bfnc, vec, w1_dev, w2_dev, ws_dev)

    return jnp.transpose(out, (0, 3, 1, 2))                    # (B, Cout, F//2, N)


# ---------------- pure-JAX reference (for correctness check) ----------------
def _q(a):
    # bf16 round-trip to mirror the kernel's matmul-input precision (f32 accumulation).
    return jnp.asarray(jnp.asarray(a, jnp.bfloat16), jnp.float32)


def _ref_conv_f(x_bfnc, w_kio, pad):
    F_ = x_bfnc.shape[1]
    xp = jnp.pad(x_bfnc, ((0, 0), (pad, pad), (0, 0), (0, 0)))
    out = 0.0
    for dk in range(w_kio.shape[0]):
        out = out + jnp.einsum("bfni,io->bfno", xp[:, dk:dk + F_], w_kio[dk])
    return out


def resblock_reference(x_nchw, params, *, approx_gelu=True):
    s1, t1, w1f, b1f, w2f, wsf, bo = _fold_params(params)
    K = params["w1"].shape[0]
    P = K // 2
    x = _q(jnp.transpose(x_nchw, (0, 2, 3, 1)))                # BFNC, bf16-rounded
    h = _gelu(x * s1 + t1, approx_gelu)
    h = _ref_conv_f(_q(h), _q(w1f), P) + b1f
    h = _gelu(h, approx_gelu)
    h = _ref_conv_f(_q(h), _q(w2f), P)
    sc = jnp.einsum("bfni,io->bfno", x, _q(wsf))
    tot = h + sc
    B, F_, N_, Cout = tot.shape
    pooled = tot.reshape(B, F_ // 2, 2, N_, Cout).sum(axis=2) + bo
    return jnp.transpose(pooled, (0, 3, 1, 2))


def make_params(key, in_ch, out_ch, k, eps=1e-5):
    ks = jax.random.split(key, 12)
    # BN1
    g1 = jax.random.uniform(ks[0], (in_ch,), minval=0.5, maxval=1.5)
    be1 = 0.1 * jax.random.normal(ks[1], (in_ch,))
    m1 = 0.1 * jax.random.normal(ks[2], (in_ch,))
    v1 = jax.random.uniform(ks[3], (in_ch,), minval=0.5, maxval=1.5)
    # BN2
    g2 = jax.random.uniform(ks[4], (out_ch,), minval=0.5, maxval=1.5)
    be2 = 0.1 * jax.random.normal(ks[5], (out_ch,))
    m2 = 0.1 * jax.random.normal(ks[6], (out_ch,))
    v2 = jax.random.uniform(ks[7], (out_ch,), minval=0.5, maxval=1.5)
    # Convs (torch layout (Cout, Cin, K, 1) -> kernel layout (K, Cin, Cout))
    w1_t = 0.1 * jax.random.normal(ks[8], (out_ch, in_ch, k))
    w2_t = 0.1 * jax.random.normal(ks[9], (out_ch, out_ch, k))
    ws_t = 0.1 * jax.random.normal(ks[10], (out_ch, in_ch))
    b1 = 0.05 * jax.random.normal(ks[11], (out_ch,))
    b2 = jnp.linspace(-0.1, 0.1, out_ch)
    bs = jnp.linspace(0.1, -0.1, out_ch)

    s1 = g1 / jnp.sqrt(v1 + eps)
    t1 = be1 - m1 * s1
    s2 = g2 / jnp.sqrt(v2 + eps)
    t2 = be2 - m2 * s2
    f32 = lambda a: jnp.asarray(a, jnp.float32)
    return {
        "s1": f32(s1)[None, :], "t1": f32(t1)[None, :],
        "w1": f32(jnp.transpose(w1_t, (2, 1, 0))), "b1": f32(b1)[None, :],
        "s2": f32(s2)[None, :], "t2": f32(t2)[None, :],
        "w2": f32(jnp.transpose(w2_t, (2, 1, 0))), "b2": f32(b2)[None, :],
        "ws": f32(ws_t.T), "bs": f32(bs)[None, :],
    }


if __name__ == "__main__":
    B, Cin, Cout, F_, N_, K = 2, 4, 8, 16, 16, 3
    key = jax.random.PRNGKey(0)
    kx, kp, kx2 = jax.random.split(key, 3)
    x = jax.random.normal(kx, (B, Cin, F_, N_), dtype=jnp.float32)
    params = make_params(kp, Cin, Cout, K)

    # 1) default path: auto conv mode (im2col for small C), tanh GELU, auto tile.
    ref = jax.block_until_ready(resblock_reference(x, params))
    out = jax.block_until_ready(resblock_pallas(x, params))
    assert out.shape == (B, Cout, F_ // 2, N_), out.shape
    np.testing.assert_allclose(np.asarray(out), np.asarray(ref), rtol=1e-2, atol=1e-2)

    # 2) K-accumulate conv path (what "auto" picks when channels are lane-wide, C >= 128).
    out_acc = jax.block_until_ready(resblock_pallas(x, params, conv_mode="accumulate"))
    np.testing.assert_allclose(np.asarray(out_acc), np.asarray(ref), rtol=1e-2, atol=1e-2)

    # 3) exact erf GELU + multi-tile N grid (N=32, TN=16) to exercise the (B, N//TN) grid.
    x2 = jax.random.normal(kx2, (B, Cin, F_, 32), dtype=jnp.float32)
    ref2 = jax.block_until_ready(resblock_reference(x2, params, approx_gelu=False))
    out2 = jax.block_until_ready(
        resblock_pallas(x2, params, tile_n=16, approx_gelu=False))
    np.testing.assert_allclose(np.asarray(out2), np.asarray(ref2), rtol=1e-2, atol=1e-2)

    print("KERNEL_OK")
</pallas_src>

<mosaic_0001>
module attributes {stable_mosaic.version = 11 : i64} {
  func.func @_resblock_kernel(%arg0: i32, %arg1: i32, %arg2: memref<1x16x16x4xbf16, #tpu.memory_space<vmem>>, %arg3: memref<8x8xf32, #tpu.memory_space<vmem>>, %arg4: memref<12x8xbf16, #tpu.memory_space<vmem>>, %arg5: memref<24x8xbf16, #tpu.memory_space<vmem>>, %arg6: memref<4x8xbf16, #tpu.memory_space<vmem>>, %arg7: memref<1x8x16x8xf32, #tpu.memory_space<vmem>>, %arg8: memref<18x16x4xbf16, #tpu.memory_space<vmem>>, %arg9: memref<18x16x8xbf16, #tpu.memory_space<vmem>>) attributes {dimension_semantics = [#tpu.dimension_semantics<parallel>, #tpu.dimension_semantics<parallel>], iteration_bounds = array<i64: 2, 1>, scalar_prefetch = 0 : i64, scratch_operands = 2 : i64, tpu.core_type = #tpu.core_type<tc>, window_params = [{transform_indices = @transform_0, window_bounds = array<i64: 1, 16, 16, 4>}, {pipeline_mode = #tpu.pipeline_mode<synchronous>, transform_indices = @transform_1, window_bounds = array<i64: 8, 8>}, {pipeline_mode = #tpu.pipeline_mode<synchronous>, transform_indices = @transform_2, window_bounds = array<i64: 12, 8>}, {pipeline_mode = #tpu.pipeline_mode<synchronous>, transform_indices = @transform_3, window_bounds = array<i64: 24, 8>}, {pipeline_mode = #tpu.pipeline_mode<synchronous>, transform_indices = @transform_4, window_bounds = array<i64: 4, 8>}, {transform_indices = @transform_5, window_bounds = array<i64: 1, 8, 16, 8>}]} {
    %c0 = arith.constant 0 : index
    %c0_0 = arith.constant 0 : index
    %c0_1 = arith.constant 0 : index
    %c0_2 = arith.constant 0 : index
    %0 = vector.load %arg2[%c0, %c0_0, %c0_1, %c0_2] : memref<1x16x16x4xbf16, #tpu.memory_space<vmem>>, vector<1x16x16x4xbf16>
    %1 = vector.shape_cast %0 : vector<1x16x16x4xbf16> to vector<16x16x4xbf16>
    %c0_3 = arith.constant 0 : index
    %c0_4 = arith.constant 0 : index
    %2 = vector.load %arg3[%c0_3, %c0_4] : memref<8x8xf32, #tpu.memory_space<vmem>>, vector<1x4xf32>
    %c1 = arith.constant 1 : index
    %c0_5 = arith.constant 0 : index
    %3 = vector.load %arg3[%c1, %c0_5] : memref<8x8xf32, #tpu.memory_space<vmem>>, vector<1x4xf32>
    %c2 = arith.constant 2 : index
    %c0_6 = arith.constant 0 : index
    %4 = vector.load %arg3[%c2, %c0_6] : memref<8x8xf32, #tpu.memory_space<vmem>>, vector<1x8xf32>
    %c3 = arith.constant 3 : index
    %c0_7 = arith.constant 0 : index
    %5 = vector.load %arg3[%c3, %c0_7] : memref<8x8xf32, #tpu.memory_space<vmem>>, vector<1x8xf32>
    %cst = arith.constant 0.000000e+00 : bf16
    %6 = vector.broadcast %cst : bf16 to vector<1x16x4xbf16>
    %c0_8 = arith.constant 0 : index
    %c0_9 = arith.constant 0 : index
    %c0_10 = arith.constant 0 : index
    %7 = vector.load %arg8[%c0_8, %c0_9, %c0_10] : memref<18x16x4xbf16, #tpu.memory_space<vmem>>, vector<1x16x4xbf16>
    tpu.vector_store %arg8[%c0_8, %c0_9, %c0_10], %6 {strides = array<i32>} : memref<18x16x4xbf16, #tpu.memory_space<vmem>>, vector<1x16x4xbf16>,
    %c17 = arith.constant 17 : index
    %c0_11 = arith.constant 0 : index
    %c0_12 = arith.constant 0 : index
    %8 = vector.load %arg8[%c17, %c0_11, %c0_12] : memref<18x16x4xbf16, #tpu.memory_space<vmem>>, vector<1x16x4xbf16>
    tpu.vector_store %arg8[%c17, %c0_11, %c0_12], %6 {strides = array<i32>} : memref<18x16x4xbf16, #tpu.memory_space<vmem>>, vector<1x16x4xbf16>,
    %cst_13 = arith.constant 0.000000e+00 : bf16
    %9 = vector.broadcast %cst_13 : bf16 to vector<1x16x8xbf16>
    %c0_14 = arith.constant 0 : index
    %c0_15 = arith.constant 0 : index
    %c0_16 = arith.constant 0 : index
    %10 = vector.load %arg9[%c0_14, %c0_15, %c0_16] : memref<18x16x8xbf16, #tpu.memory_space<vmem>>, vector<1x16x8xbf16>
    tpu.vector_store %arg9[%c0_14, %c0_15, %c0_16], %9 {strides = array<i32>} : memref<18x16x8xbf16, #tpu.memory_space<vmem>>, vector<1x16x8xbf16>,
    %c17_17 = arith.constant 17 : index
    %c0_18 = arith.constant 0 : index
    %c0_19 = arith.constant 0 : index
    %11 = vector.load %arg9[%c17_17, %c0_18, %c0_19] : memref<18x16x8xbf16, #tpu.memory_space<vmem>>, vector<1x16x8xbf16>
    tpu.vector_store %arg9[%c17_17, %c0_18, %c0_19], %9 {strides = array<i32>} : memref<18x16x8xbf16, #tpu.memory_space<vmem>>, vector<1x16x8xbf16>,
    %12 = arith.extf %1 : vector<16x16x4xbf16> to vector<16x16x4xf32>
    %13 = vector.shape_cast %2 : vector<1x4xf32> to vector<1x1x4xf32>
    %14 = vector.broadcast %13 : vector<1x1x4xf32> to vector<16x16x4xf32>
    %15 = arith.mulf %12, %14 : vector<16x16x4xf32>
    %16 = vector.shape_cast %3 : vector<1x4xf32> to vector<1x1x4xf32>
    %17 = vector.broadcast %16 : vector<1x1x4xf32> to vector<16x16x4xf32>
    %18 = arith.addf %15, %17 : vector<16x16x4xf32>
    %cst_20 = arith.constant 5.000000e-01 : f32
    %19 = vector.broadcast %cst_20 : f32 to vector<16x16x4xf32>
    %20 = arith.mulf %19, %18 : vector<16x16x4xf32>
    %21 = arith.mulf %18, %18 : vector<16x16x4xf32>
    %22 = arith.mulf %21, %18 : vector<16x16x4xf32>
    %cst_21 = arith.constant 4.471500e-02 : f32
    %23 = vector.broadcast %cst_21 : f32 to vector<16x16x4xf32>
    %24 = arith.mulf %23, %22 : vector<16x16x4xf32>
    %25 = arith.addf %18, %24 : vector<16x16x4xf32>
    %cst_22 = arith.constant 0.797884583 : f32
    %26 = vector.broadcast %cst_22 : f32 to vector<16x16x4xf32>
    %27 = arith.mulf %26, %25 : vector<16x16x4xf32>
    %28 = math.tanh %27 : vector<16x16x4xf32>
    %cst_23 = arith.constant 1.000000e+00 : f32
    %29 = vector.broadcast %cst_23 : f32 to vector<16x16x4xf32>
    %30 = arith.addf %29, %28 : vector<16x16x4xf32>
    %31 = arith.mulf %20, %30 : vector<16x16x4xf32>
    %32 = arith.truncf %31 : vector<16x16x4xf32> to vector<16x16x4xbf16>
    %c1_24 = arith.constant 1 : index
    %c0_25 = arith.constant 0 : index
    %c0_26 = arith.constant 0 : index
    %33 = vector.load %arg8[%c1_24, %c0_25, %c0_26] : memref<18x16x4xbf16, #tpu.memory_space<vmem>>, vector<16x16x4xbf16>
    tpu.vector_store %arg8[%c1_24, %c0_25, %c0_26], %32 {strides = array<i32>} : memref<18x16x4xbf16, #tpu.memory_space<vmem>>, vector<16x16x4xbf16>,
    %c0_27 = arith.constant 0 : index
    %c0_28 = arith.constant 0 : index
    %c0_29 = arith.constant 0 : index
    %34 = vector.load %arg8[%c0_27, %c0_28, %c0_29] : memref<18x16x4xbf16, #tpu.memory_space<vmem>>, vector<16x16x4xbf16>
    %c1_30 = arith.constant 1 : index
    %c0_31 = arith.constant 0 : index
    %c0_32 = arith.constant 0 : index
    %35 = vector.load %arg8[%c1_30, %c0_31, %c0_32] : memref<18x16x4xbf16, #tpu.memory_space<vmem>>, vector<16x16x4xbf16>
    %c2_33 = arith.constant 2 : index
    %c0_34 = arith.constant 0 : index
    %c0_35 = arith.constant 0 : index
    %36 = vector.load %arg8[%c2_33, %c0_34, %c0_35] : memref<18x16x4xbf16, #tpu.memory_space<vmem>>, vector<16x16x4xbf16>
    %37 = tpu.concatenate %34, %35, %36 in 2 : vector<16x16x4xbf16>, vector<16x16x4xbf16>, vector<16x16x4xbf16> -> vector<16x16x12xbf16>
    %38 = vector.shape_cast %37 : vector<16x16x12xbf16> to vector<256x12xbf16>
    %c0_36 = arith.constant 0 : index
    %c0_37 = arith.constant 0 : index
    %39 = vector.load %arg4[%c0_36, %c0_37] : memref<12x8xbf16, #tpu.memory_space<vmem>>, vector<12x8xbf16>
    %cst_38 = arith.constant dense<0.000000e+00> : vector<256x8xf32>
    %40 = tpu.matmul %38, %39, %cst_38 {dimension_numbers = #tpu.dot_dimension_numbers<[1], [0], [0], [1], [0, 0, 1, 1], [], []>} : vector<256x12xbf16>, vector<12x8xbf16>, vector<256x8xf32> -> vector<256x8xf32>
    %41 = vector.broadcast %4 : vector<1x8xf32> to vector<256x8xf32>
    %42 = arith.addf %40, %41 : vector<256x8xf32>
    %cst_39 = arith.constant 5.000000e-01 : f32
    %43 = vector.broadcast %cst_39 : f32 to vector<256x8xf32>
    %44 = arith.mulf %43, %42 : vector<256x8xf32>
    %45 = arith.mulf %42, %42 : vector<256x8xf32>
    %46 = arith.mulf %45, %42 : vector<256x8xf32>
    %cst_40 = arith.constant 4.471500e-02 : f32
    %47 = vector.broadcast %cst_40 : f32 to vector<256x8xf32>
    %48 = arith.mulf %47, %46 : vector<256x8xf32>
    %49 = arith.addf %42, %48 : vector<256x8xf32>
    %cst_41 = arith.constant 0.797884583 : f32
    %50 = vector.broadcast %cst_41 : f32 to vector<256x8xf32>
    %51 = arith.mulf %50, %49 : vector<256x8xf32>
    %52 = math.tanh %51 : vector<256x8xf32>
    %cst_42 = arith.constant 1.000000e+00 : f32
    %53 = vector.broadcast %cst_42 : f32 to vector<256x8xf32>
    %54 = arith.addf %53, %52 : vector<256x8xf32>
    %55 = arith.mulf %44, %54 : vector<256x8xf32>
    %56 = vector.shape_cast %55 : vector<256x8xf32> to vector<16x16x8xf32>
    %57 = arith.truncf %56 : vector<16x16x8xf32> to vector<16x16x8xbf16>
    %c1_43 = arith.constant 1 : index
    %c0_44 = arith.constant 0 : index
    %c0_45 = arith.constant 0 : index
    %58 = vector.load %arg9[%c1_43, %c0_44, %c0_45] : memref<18x16x8xbf16, #tpu.memory_space<vmem>>, vector<16x16x8xbf16>
    tpu.vector_store %arg9[%c1_43, %c0_44, %c0_45], %57 {strides = array<i32>} : memref<18x16x8xbf16, #tpu.memory_space<vmem>>, vector<16x16x8xbf16>,
    %c0_46 = arith.constant 0 : index
    %c0_47 = arith.constant 0 : index
    %c0_48 = arith.constant 0 : index
    %59 = vector.load %arg9[%c0_46, %c0_47, %c0_48] : memref<18x16x8xbf16, #tpu.memory_space<vmem>>, vector<16x16x8xbf16>
    %c1_49 = arith.constant 1 : index
    %c0_50 = arith.constant 0 : index
    %c0_51 = arith.constant 0 : index
    %60 = vector.load %arg9[%c1_49, %c0_50, %c0_51] : memref<18x16x8xbf16, #tpu.memory_space<vmem>>, vector<16x16x8xbf16>
    %c2_52 = arith.constant 2 : index
    %c0_53 = arith.constant 0 : index
    %c0_54 = arith.constant 0 : index
    %61 = vector.load %arg9[%c2_52, %c0_53, %c0_54] : memref<18x16x8xbf16, #tpu.memory_space<vmem>>, vector<16x16x8xbf16>
    %62 = tpu.concatenate %59, %60, %61 in 2 : vector<16x16x8xbf16>, vector<16x16x8xbf16>, vector<16x16x8xbf16> -> vector<16x16x24xbf16>
    %63 = vector.shape_cast %62 : vector<16x16x24xbf16> to vector<256x24xbf16>
    %c0_55 = arith.constant 0 : index
    %c0_56 = arith.constant 0 : index
    %64 = vector.load %arg5[%c0_55, %c0_56] : memref<24x8xbf16, #tpu.memory_space<vmem>>, vector<24x8xbf16>
    %cst_57 = arith.constant dense<0.000000e+00> : vector<256x8xf32>
    %65 = tpu.matmul %63, %64, %cst_57 {dimension_numbers = #tpu.dot_dimension_numbers<[1], [0], [0], [1], [0, 0, 1, 1], [], []>} : vector<256x24xbf16>, vector<24x8xbf16>, vector<256x8xf32> -> vector<256x8xf32>
    %66 = vector.shape_cast %1 : vector<16x16x4xbf16> to vector<256x4xbf16>
    %c0_58 = arith.constant 0 : index
    %c0_59 = arith.constant 0 : index
    %67 = vector.load %arg6[%c0_58, %c0_59] : memref<4x8xbf16, #tpu.memory_space<vmem>>, vector<4x8xbf16>
    %cst_60 = arith.constant dense<0.000000e+00> : vector<256x8xf32>
    %68 = tpu.matmul %66, %67, %cst_60 {dimension_numbers = #tpu.dot_dimension_numbers<[1], [0], [0], [1], [0, 0, 1, 1], [], []>} : vector<256x4xbf16>, vector<4x8xbf16>, vector<256x8xf32> -> vector<256x8xf32>
    %69 = arith.addf %65, %68 : vector<256x8xf32>
    %70 = vector.shape_cast %69 : vector<256x8xf32> to vector<8x2x16x8xf32>
    %71 = vector.extract_strided_slice %70 {offsets = [0, 0, 0, 0], sizes = [8, 1, 16, 8], strides = [1, 1, 1, 1]} : vector<8x2x16x8xf32> to vector<8x1x16x8xf32>
    %72 = vector.shape_cast %71 : vector<8x1x16x8xf32> to vector<8x16x8xf32>
    %73 = vector.extract_strided_slice %70 {offsets = [0, 1, 0, 0], sizes = [8, 1, 16, 8], strides = [1, 1, 1, 1]} : vector<8x2x16x8xf32> to vector<8x1x16x8xf32>
    %74 = vector.shape_cast %73 : vector<8x1x16x8xf32> to vector<8x16x8xf32>
    %75 = arith.addf %72, %74 : vector<8x16x8xf32>
    %76 = vector.shape_cast %5 : vector<1x8xf32> to vector<1x1x8xf32>
    %77 = vector.broadcast %76 : vector<1x1x8xf32> to vector<8x16x8xf32>
    %78 = arith.addf %75, %77 : vector<8x16x8xf32>
    %c0_61 = arith.constant 0 : index
    %c0_62 = arith.constant 0 : index
    %c0_63 = arith.constant 0 : index
    %c0_64 = arith.constant 0 : index
    %79 = vector.load %arg7[%c0_61, %c0_62, %c0_63, %c0_64] : memref<1x8x16x8xf32, #tpu.memory_space<vmem>>, vector<1x8x16x8xf32>
    %80 = vector.shape_cast %79 : vector<1x8x16x8xf32> to vector<8x16x8xf32>
    %81 = vector.shape_cast %78 : vector<8x16x8xf32> to vector<1x8x16x8xf32>
    tpu.vector_store %arg7[%c0_61, %c0_62, %c0_63, %c0_64], %81 {strides = array<i32>} : memref<1x8x16x8xf32, #tpu.memory_space<vmem>>, vector<1x8x16x8xf32>,
    return
  }
  func.func @transform_0(%arg0: i32, %arg1: i32) -> (i32, i32, i32, i32) {
    %c0_i32 = arith.constant 0 : i32
    %c0_i32_0 = arith.constant 0 : i32
    %c0_i32_1 = arith.constant 0 : i32
    return %arg0, %c0_i32, %arg1, %c0_i32_0 : i32, i32, i32, i32
  }
  func.func @transform_1(%arg0: i32, %arg1: i32) -> (i32, i32) {
    %c0_i32 = arith.constant 0 : i32
    %c0_i32_0 = arith.constant 0 : i32
    %c0_i32_1 = arith.constant 0 : i32
    return %c0_i32, %c0_i32_0 : i32, i32
  }
  func.func @transform_2(%arg0: i32, %arg1: i32) -> (i32, i32) {
    %c0_i32 = arith.constant 0 : i32
    %c0_i32_0 = arith.constant 0 : i32
    %c0_i32_1 = arith.constant 0 : i32
    return %c0_i32, %c0_i32_0 : i32, i32
  }
  func.func @transform_3(%arg0: i32, %arg1: i32) -> (i32, i32) {
    %c0_i32 = arith.constant 0 : i32
    %c0_i32_0 = arith.constant 0 : i32
    %c0_i32_1 = arith.constant 0 : i32
    return %c0_i32, %c0_i32_0 : i32, i32
  }
  func.func @transform_4(%arg0: i32, %arg1: i32) -> (i32, i32) {
    %c0_i32 = arith.constant 0 : i32
    %c0_i32_0 = arith.constant 0 : i32
    %c0_i32_1 = arith.constant 0 : i32
    return %c0_i32, %c0_i32_0 : i32, i32
  }
  func.func @transform_5(%arg0: i32, %arg1: i32) -> (i32, i32, i32, i32) {
    %c0_i32 = arith.constant 0 : i32
    %c0_i32_0 = arith.constant 0 : i32
    %c0_i32_1 = arith.constant 0 : i32
    return %arg0, %c0_i32, %arg1, %c0_i32_0 : i32, i32, i32, i32
  }
}

</mosaic_0001>

<bundles_post_ra>
// kernel: tpu_custom_call.1
= control target key start
LH: loop header
LB: loop body
LE: loop exit
PB: predicated region body
PF: predicated region fallthrough
CT: control target
= control target key end

     0   :  { %s2877_s18 = smov 0   ;;  %s2879_s19 = smov 0   ;;  %s3958_s0 = inlined_call_operand.vmem [shape: bf16[2,16,16,4], index: 0, kind: input, shape index: {}]   ;;  %s3959_s1 = inlined_call_operand.vmem [shape: f32[8,8], index: 1, kind: input, shape index: {}]   ;;  %s3960_s2 = inlined_call_operand.vmem [shape: bf16[12,8], index: 2, kind: input, shape index: {}]   ;;  %s3961_s3 = inlined_call_operand.vmem [shape: bf16[24,8], index: 3, kind: input, shape index: {}]   ;;  %s3962_s4 = inlined_call_operand.vmem [shape: bf16[4,8], index: 4, kind: input, shape index: {}]   ;;  %s3963_s5 = inlined_call_operand.vmem [shape: f32[2,8,16,8], index: 5, kind: output, shape index: {}]  }
   0x1   :  { %s2881_s20 = smov 0  }
   0x2 LB: > { %s27_s21 = sadd.s32 1, %s2837_s19  ;;  %p2362_p0 = scmp.ge.s32.totalorder %s2841_s20, 1  ;;  %s2841_s20 = sphi %s2881_s20, %s15_s20   ;;  %s2837_s19 = sphi %s2879_s19, %s3965_s19   ;;  %s2833_s18 = sphi %s2877_s18, %s3964_s18  }
   0x3   : > { %p29_p1 = scmp.ge.s32.totalorder %s27_s21, 2  ;;  %p208_p2 = scmp.lt.s32.totalorder %s2841_s20, 3 }
   0x5   : > { %s3967_s21 = smov (%p29_p1, %s27_s21), 0  ;;  %p209_p3 = pnand %p2362_p0, %p208_p2 }
   0x6   : > { %p245_p4 = scmp.lt.s32.totalorder (!%p209_p3), %s2833_s18, 1  ;;  %vm301_vm0 = vcmask (!%p209_p3), 31744   ;;  %v2843_v0 = vmov (!%p209_p3), 0   ;;  %v2912_v1 = vld [vmem:[%s3959_s1] ss:$0 sm:$0xff] (!%p209_p3)  ;;  %s2844_s30 = smov (!%p209_p3), 8  }
   0x7   : > { %212 = sbr.rel (%p209_p3) target bundleno = 860 (0x35c), region = 40  ;;  %304 = vst.msk [vmem:[#allocation2 + $0x88] sm:$0xff] (!%p209_p3), %vm301_vm0, %v2843_v0  ;;  %302 = vst.msk [vmem:[#allocation2] sm:$0xff] (!%p209_p3), %vm301_vm0, %v2843_v0  ;;  %v2921_v10 = vld [vmem:[%s3959_s1 + $0x1] ss:$0 sm:$0xff] (!%p209_p3)  ;;  %s2845_s6 = smov (!%p209_p3), 4  }
   0x8   : > { %vm1003_vm1 = vcmask (!%p209_p3), 1045504   ;;  %vm305_vm2 = vcmask (!%p209_p3), 64512   ;;  %vm970_vm3 = vcmask (!%p209_p3), 97280   ;;  %vm1847_vm4 = vcmask (!%p209_p3), 1041408   ;;  %s2846_s17 = smov (!%p209_p3), 16  }
   0x9   : > { %306 = vst.msk [vmem:[#allocation3] sm:$0xff] (!%p209_p3), %vm305_vm2, %v2843_v0  ;;  %308 = vst.msk [vmem:[#allocation3 + $0x88] sm:$0xff] (!%p209_p3), %vm305_vm2, %v2843_v0  ;;  %vm2054_vm5 = vcmask (!%p209_p3), 1043456   ;;  %vm1682_vm6 = vcmask (!%p209_p3), 130048   ;;  %vm2021_vm7 = vcmask (!%p209_p3), 195584  }
   0xe   : > { %s3969_s18 = smov (!%p245_p4, %s2833_s18), 1 }
   0xf   : > { %s2440_s22 = sshll.u32 %s3969_s18, 7 }
  0x10   : > { %s2907_s25 = scalar_lea.vmem %s3958_s0, %s2440_s22  ;;  %s3899_s27 = scalar_lea.vmem %s3963_s5, %s2440_s22 }
  0x11   : > { %v267_v2 = vld [vmem:[%s2907_s25 + $0x8] sm:$0xff]   ;;  %v265_v3 = vld [vmem:[%s2907_s25] sm:$0xff]   ;;  %v269_v4 = vld [vmem:[%s2907_s25 + $0x10] sm:$0xff]  }
  0x12   : > { %v311_v5 = vunpack.c.l.bf16 %v267_v2  ;;  %v312_v6 = vunpack.c.h.bf16 %v267_v2  ;;  %v309_v7 = vunpack.c.l.bf16 %v265_v3  ;;  %v310_v8 = vunpack.c.h.bf16 %v265_v3  ;;  %v271_v9 = vld [vmem:[%s2907_s25 + $0x18] sm:$0xff]   ;;  %v273_v59 = vld [vmem:[%s2907_s25 + $0x20] sm:$0xff]  }
  0x13   : > { %v313_v11 = vunpack.c.l.bf16 %v269_v4  ;;  %v314_v12 = vunpack.c.h.bf16 %v269_v4  ;;  %v315_v13 = vunpack.c.l.bf16 %v271_v9  ;;  %v316_v14 = vunpack.c.h.bf16 %v271_v9  ;;  %v275_v9 = vld [vmem:[%s2907_s25 + $0x28] sm:$0xff]  }
  0x14   : > { %v347_v15 = vmul.f32 %v2912_v1, %v311_v5  ;;  %v348_v16 = vmul.f32 %v2912_v1, %v312_v6  ;;  %v345_v17 = vmul.f32 %v2912_v1, %v309_v7  ;;  %v346_v18 = vmul.f32 %v2912_v1, %v310_v8 }
  0x15   : > { %v349_v19 = vmul.f32 %v2912_v1, %v313_v11  ;;  %v350_v20 = vmul.f32 %v2912_v1, %v314_v12  ;;  %v351_v21 = vmul.f32 %v2912_v1, %v315_v13  ;;  %v352_v22 = vmul.f32 %v2912_v1, %v316_v14 }
  0x16   : > { %v383_v23 = vadd.f32 %v2921_v10, %v347_v15  ;;  %v384_v24 = vadd.f32 %v2921_v10, %v348_v16  ;;  %v381_v25 = vadd.f32 %v2921_v10, %v345_v17  ;;  %v382_v26 = vadd.f32 %v2921_v10, %v346_v18 }
  0x17   : > { %v2936_v27 = vadd.f32 %v2921_v10, %v349_v19  ;;  %v2939_v28 = vadd.f32 %v2921_v10, %v350_v20  ;;  %v2942_v33 = vadd.f32 %v2921_v10, %v351_v21  ;;  %v2945_v34 = vadd.f32 %v2921_v10, %v352_v22  ;;  %v277_v20 = vld [vmem:[%s2907_s25 + $0x30] sm:$0xff]  }
  0x18   : > { %v447_v29 = vmul.f32 %v383_v23, %v383_v23  ;;  %v448_v30 = vmul.f32 %v384_v24, %v384_v24  ;;  %v445_v31 = vmul.f32 %v381_v25, %v381_v25  ;;  %v446_v32 = vmul.f32 %v382_v26, %v382_v26 }
  0x19   : > { %v2947_v35 = vmul.f32 0.5, %v383_v23  ;;  %v2949_v36 = vmul.f32 0.5, %v384_v24  ;;  %v449_v41 = vmul.f32 %v2936_v27, %v2936_v27  ;;  %v450_v42 = vmul.f32 %v2939_v28, %v2939_v28 }
  0x1a   : > { %v479_v37 = vmul.f32 %v447_v29, %v383_v23  ;;  %v480_v38 = vmul.f32 %v448_v30, %v384_v24  ;;  %v477_v39 = vmul.f32 %v445_v31, %v381_v25  ;;  %v478_v40 = vmul.f32 %v446_v32, %v382_v26 }
  0x1b   : > { %v2955_v45 = vmul.f32 0.5, %v381_v25  ;;  %v2957_v46 = vmul.f32 0.5, %v382_v26  ;;  %v481_v49 = vmul.f32 %v449_v41, %v2936_v27  ;;  %v482_v50 = vmul.f32 %v450_v42, %v2939_v28 }
  0x1c   : > { %v511_v43 = vmul.f32 0.044715, %v479_v37  ;;  %v512_v44 = vmul.f32 0.044715, %v480_v38  ;;  %v509_v47 = vmul.f32 0.044715, %v477_v39  ;;  %v451_v53 = vmul.f32 %v2942_v33, %v2942_v33 }
  0x1d   : > { %v510_v48 = vmul.f32 0.044715, %v478_v40  ;;  %v452_v54 = vmul.f32 %v2945_v34, %v2945_v34  ;;  %v513_v57 = vmul.f32 0.044715, %v481_v49  ;;  %v514_v58 = vmul.f32 0.044715, %v482_v50 }
  0x1e   : > { %v543_v51 = vadd.f32 %v511_v43, %v383_v23  ;;  %v544_v52 = vadd.f32 %v512_v44, %v384_v24  ;;  %v541_v55 = vadd.f32 %v509_v47, %v381_v25  ;;  %v483_v62 = vmul.f32 %v451_v53, %v2942_v33  ;;  %v2994_v39 = vld [vmem:[%s2907_s25 + $0x38] sm:$0xff]  }
  0x1f   : > { %v542_v56 = vadd.f32 %v510_v48, %v382_v26  ;;  %v484_v63 = vmul.f32 %v452_v54, %v2945_v34  ;;  %v545_v4 = vadd.f32 %v513_v57, %v2936_v27  ;;  %v546_v5 = vadd.f32 %v514_v58, %v2939_v28 }
  0x20   : > { %v575_v60 = vmul.f32 0.7978846, %v543_v51  ;;  %v576_v61 = vmul.f32 0.7978846, %v544_v52  ;;  %v573_v2 = vmul.f32 0.7978846, %v541_v55  ;;  %v317_v8 = vunpack.c.l.bf16 %v273_v59 }
  0x21   : > { %v574_v3 = vmul.f32 0.7978846, %v542_v56  ;;  %v515_v6 = vmul.f32 0.044715, %v483_v62  ;;  %v516_v7 = vmul.f32 0.044715, %v484_v63  ;;  %v318_v13 = vunpack.c.h.bf16 %v273_v59 }
  0x22   : > { %2683 = vtanh.f32 %v575_v60  ;;  %v577_v11 = vmul.f32 0.7978846, %v545_v4  ;;  %v578_v12 = vmul.f32 0.7978846, %v546_v5  ;;  %v353_v16 = vmul.f32 %v2912_v1, %v317_v8 }
  0x23   : > { %2685 = vtanh.f32 %v576_v61  ;;  %v547_v14 = vadd.f32 %v515_v6, %v2942_v33  ;;  %v548_v15 = vadd.f32 %v516_v7, %v2945_v34  ;;  %v354_v17 = vmul.f32 %v2912_v1, %v318_v13 }
  0x24   : > { %2687 = vtanh.f32 %v573_v2  ;;  %v319_v18 = vunpack.c.l.bf16 %v275_v9  ;;  %v320_v19 = vunpack.c.h.bf16 %v275_v9  ;;  %v2977_v23 = vadd.f32 %v2921_v10, %v353_v16 }
  0x25   : > { %2689 = vtanh.f32 %v574_v3  ;;  %v579_v21 = vmul.f32 0.7978846, %v547_v14  ;;  %v580_v22 = vmul.f32 0.7978846, %v548_v15  ;;  %v2980_v24 = vadd.f32 %v2921_v10, %v354_v17 }
  0x26   : > { %2691 = vtanh.f32 %v577_v11  ;;  %v355_v25 = vmul.f32 %v2912_v1, %v319_v18  ;;  %v356_v26 = vmul.f32 %v2912_v1, %v320_v19  ;;  %v417_v29 = vmul.f32 0.5, %v2936_v27 }
  0x27   : > { %2693 = vtanh.f32 %v578_v12  ;;  %v453_v30 = vmul.f32 %v2977_v23, %v2977_v23  ;;  %v321_v31 = vunpack.c.l.bf16 %v277_v20  ;;  %v418_v32 = vmul.f32 0.5, %v2939_v28 }
  0x28   : > { %2695 = vtanh.f32 %v579_v21  ;;  %v454_v37 = vmul.f32 %v2980_v24, %v2980_v24  ;;  %v2991_v38 = vadd.f32 %v2921_v10, %v355_v25  ;;  %v2998_v27 = vadd.f32 %v2921_v10, %v356_v26 }
  0x29   : > { %2697 = vtanh.f32 %v580_v22  ;;  %v485_v40 = vmul.f32 %v453_v30, %v2977_v23  ;;  %v322_v41 = vunpack.c.h.bf16 %v277_v20  ;;  %v357_v42 = vmul.f32 %v2912_v1, %v321_v31  ;;  %v3028_v31 = vld [vmem:[%s2907_s25 + $0x40] sm:$0xff]  }
  0x2a   : > { %v419_v43 = vmul.f32 0.5, %v2942_v33  ;;  %v420_v28 = vmul.f32 0.5, %v2945_v34  ;;  %v486_v44 = vmul.f32 %v454_v37, %v2980_v24  ;;  %v455_v47 = vmul.f32 %v2991_v38, %v2991_v38  ;;  %2546 = vmatprep.mubr.msk.bf16.mxu1 %vm301_vm0, %v3028_v31 }
  0x2b   : > { %v517_v49 = vmul.f32 0.044715, %v485_v40  ;;  %v456_v50 = vmul.f32 %v2998_v27, %v2998_v27  ;;  %v358_v51 = vmul.f32 %v2912_v1, %v322_v41  ;;  %v323_v52 = vunpack.c.l.bf16 %v2994_v39 }
  0x2c   : > { %v2684_v48 = vpop.eup %2683  ;;  %v518_v55 = vmul.f32 0.044715, %v486_v44  ;;  %v487_v33 = vmul.f32 %v455_v47, %v2991_v38  ;;  %v3012_v34 = vadd.f32 %v2921_v10, %v357_v42  ;;  %v325_v44 = vunpack.c.l.bf16 %v3028_v31  ;;  %v3042_v47 = vld [vmem:[%s2907_s25 + $0x48] sm:$0xff]  }
  0x2d   : > { %v2686_v53 = vpop.eup %2685  ;;  %v639_v54 = vadd.f32 1.0, %v2684_v48  ;;  %v549_v58 = vadd.f32 %v517_v49, %v2977_v23  ;;  %v488_v59 = vmul.f32 %v456_v50, %v2998_v27  ;;  %v3017_v60 = vadd.f32 %v2921_v10, %v358_v51 }
  0x2e   : > { %v2688_v56 = vpop.eup %2687  ;;  %v640_v57 = vadd.f32 1.0, %v2686_v53  ;;  %v550_v2 = vadd.f32 %v518_v55, %v2980_v24  ;;  %v519_v3 = vmul.f32 0.044715, %v487_v33  ;;  %v359_v41 = vmul.f32 %v2912_v1, %v323_v52 }
  0x2f   : > { %v2690_v61 = vpop.eup %2689  ;;  %v671_v62 = vmul.f32 %v639_v54, %v2947_v35  ;;  %v637_v63 = vadd.f32 1.0, %v2688_v56  ;;  %v581_v7 = vmul.f32 0.7978846, %v549_v58  ;;  %v520_v8 = vmul.f32 0.044715, %v488_v59 }
  0x30   : > { %v2692_v4 = vpop.eup %2691  ;;  %v672_v5 = vmul.f32 %v640_v57, %v2949_v36  ;;  %v638_v6 = vadd.f32 1.0, %v2690_v61  ;;  %v582_v13 = vmul.f32 0.7978846, %v550_v2  ;;  %v551_v14 = vadd.f32 %v519_v3, %v2991_v38 }
  0x31   : > { %v2694_v9 = vpop.eup %2693  ;;  %v669_v11 = vmul.f32 %v637_v63, %v2955_v45  ;;  %v641_v12 = vadd.f32 1.0, %v2692_v4  ;;  %2699 = vtanh.f32 %v581_v7  ;;  %v552_v20 = vadd.f32 %v520_v8, %v2998_v27 }
  0x32   : > { %v2696_v15 = vpop.eup %2695  ;;  %v702_v16 = vpack.c.bf16 %v672_v5, %v671_v62  ;;  %v670_v35 = vmul.f32 %v638_v6, %v2957_v46  ;;  %v642_v17 = vadd.f32 1.0, %v2694_v9  ;;  %2701 = vtanh.f32 %v582_v13 }
  0x33   : > { %v2698_v18 = vpop.eup %2697  ;;  %v673_v19 = vmul.f32 %v641_v12, %v417_v29  ;;  %v643_v36 = vadd.f32 1.0, %v2696_v15  ;;  %v583_v25 = vmul.f32 0.7978846, %v551_v14  ;;  %v584_v30 = vmul.f32 0.7978846, %v552_v20 }
  0x34   : > { %719 = vst.msk [vmem:[#allocation2 + $0x10] sm:$0xff] %vm301_vm0, %v702_v16  ;;  %v701_v45 = vpack.c.bf16 %v670_v35, %v669_v11  ;;  %v674_v21 = vmul.f32 %v642_v17, %v418_v32  ;;  %v644_v22 = vadd.f32 1.0, %v2698_v18  ;;  %v457_v29 = vmul.f32 %v3012_v34, %v3012_v34 }
  0x35   : > { %v675_v26 = vmul.f32 %v643_v36, %v419_v43  ;;  %2703 = vtanh.f32 %v583_v25  ;;  %v458_v40 = vmul.f32 %v3017_v60, %v3017_v60  ;;  %v324_v32 = vunpack.c.h.bf16 %v2994_v39 }
  0x36   : > { %718 = vst.msk [vmem:[#allocation2 + $0x8] sm:$0xff] %vm301_vm0, %v701_v45  ;;  %v703_v46 = vpack.c.bf16 %v674_v21, %v673_v19  ;;  %v676_v37 = vmul.f32 %v644_v22, %v420_v28  ;;  %2705 = vtanh.f32 %v584_v30  ;;  %v489_v43 = vmul.f32 %v457_v29, %v3012_v34  ;;  %v3095_v30 = vld [vmem:[%s2907_s25 + $0x50] sm:$0xff]  }
  0x37   : > { %v326_v28 = vunpack.c.h.bf16 %v3028_v31  ;;  %v421_v48 = vmul.f32 0.5, %v2977_v23  ;;  %v490_v49 = vmul.f32 %v458_v40, %v3017_v60  ;;  %v360_v50 = vmul.f32 %v2912_v1, %v324_v32 }
  0x38   : > { %720 = vst.msk [vmem:[#allocation2 + $0x18] sm:$0xff] %vm301_vm0, %v703_v46  ;;  %v704_v42 = vpack.c.bf16 %v676_v37, %v675_v26  ;;  %v3048_v39 = vadd.f32 %v2921_v10, %v359_v41  ;;  %v422_v51 = vmul.f32 0.5, %v2980_v24  ;;  %v521_v52 = vmul.f32 0.044715, %v489_v43 }
  0x39   : > { %v361_v53 = vmul.f32 %v2912_v1, %v325_v44  ;;  %v362_v54 = vmul.f32 %v2912_v1, %v326_v28  ;;  %v522_v33 = vmul.f32 0.044715, %v490_v49  ;;  %v3055_v23 = vadd.f32 %v2921_v10, %v360_v50 }
  0x3a   : > { %721 = vst.msk [vmem:[#allocation2 + $0x20] sm:$0xff] %vm301_vm0, %v704_v42  ;;  %v459_v56 = vmul.f32 %v3048_v39, %v3048_v39  ;;  %v327_v57 = vunpack.c.l.bf16 %v3042_v47  ;;  %v423_v24 = vmul.f32 0.5, %v2991_v38  ;;  %v424_v59 = vmul.f32 0.5, %v2998_v27 }
  0x3b   : > { %v767_v55 = vld [vmem:[#allocation2 + $0x10] sm:$0xff]  ;;  %v2700_v58 = vpop.eup %2699  ;;  %v553_v61 = vadd.f32 %v521_v52, %v3012_v34  ;;  %v3065_v62 = vadd.f32 %v2921_v10, %v361_v53  ;;  %v554_v4 = vadd.f32 %v522_v33, %v3017_v60  ;;  %v460_v5 = vmul.f32 %v3055_v23, %v3055_v23  ;;  %v3115_v53 = vld [vmem:[%s2907_s25 + $0x58] sm:$0xff]  }
  0x3c   : > { %847 = vrot.lane.b32.xlu1 %v767_v55, %s2844_s30  ;;  %v2702_v63 = vpop.eup %2701  ;;  %v645_v3 = vadd.f32 1.0, %v2700_v58  ;;  %v3073_v6 = vadd.f32 %v2921_v10, %v362_v54  ;;  %v491_v7 = vmul.f32 %v459_v56, %v3048_v39  ;;  %v328_v8 = vunpack.c.h.bf16 %v3042_v47 }
  0x3d   : > { %v3067_v2 = vld [vmem:[#allocation2 + $0x8] sm:$0xff]  ;;  %v646_v38 = vadd.f32 1.0, %v2702_v63  ;;  %v585_v27 = vmul.f32 0.7978846, %v553_v61  ;;  %v586_v12 = vmul.f32 0.7978846, %v554_v4  ;;  %v492_v13 = vmul.f32 %v460_v5, %v3055_v23 }
  0x3e   : > { %799 = vrot.lane.b32.xlu0 %v3067_v2, %s2845_s6  ;;  %v677_v11 = vmul.f32 %v645_v3, %v421_v48  ;;  %v363_v14 = vmul.f32 %v2912_v1, %v327_v57  ;;  %v523_v35 = vmul.f32 0.044715, %v491_v7  ;;  %v461_v17 = vmul.f32 %v3065_v62, %v3065_v62 }
  0x3f   : > { %v3079_v9 = vld [vmem:[#allocation2 + $0x18] sm:$0xff]  ;;  %v2704_v15 = vpop.eup %2703  ;;  %v678_v16 = vmul.f32 %v646_v38, %v422_v51  ;;  %2707 = vtanh.f32 %v585_v27  ;;  %v524_v20 = vmul.f32 0.044715, %v492_v13  ;;  %v462_v45 = vmul.f32 %v3073_v6, %v3073_v6 }
  0x40   : > { %849 = vrot.lane.b32.xlu1 %v3079_v9, %s2844_s30  ;;  %v2706_v18 = vpop.eup %2705  ;;  %v647_v36 = vadd.f32 1.0, %v2704_v15  ;;  %2709 = vtanh.f32 %v586_v12  ;;  %v555_v25 = vadd.f32 %v523_v35, %v3048_v39  ;;  %v493_v26 = vmul.f32 %v461_v17, %v3065_v62 }
  0x41   : > { %v3087_v19 = vld [vmem:[#allocation2 + $0x20] sm:$0xff]  ;;  %v705_v21 = vpack.c.bf16 %v678_v16, %v677_v11  ;;  %v648_v22 = vadd.f32 1.0, %v2706_v18  ;;  %v556_v37 = vadd.f32 %v524_v20, %v3055_v23  ;;  %v494_v29 = vmul.f32 %v462_v45, %v3073_v6 }
  0x42   : > { %801 = vrot.lane.b32.xlu0 %v767_v55, %s2845_s6  ;;  %v679_v46 = vmul.f32 %v647_v36, %v423_v24  ;;  %v364_v40 = vmul.f32 %v2912_v1, %v328_v8  ;;  %v587_v41 = vmul.f32 0.7978846, %v555_v25  ;;  %v525_v42 = vmul.f32 0.044715, %v493_v26  ;;  %v3150_v36 = vld [vmem:[%s2907_s25 + $0x60] sm:$0xff]  }
  0x43   : > { %722 = vst.msk [vmem:[#allocation2 + $0x28] sm:$0xff] %vm301_vm0, %v705_v21  ;;  %v680_v32 = vmul.f32 %v648_v22, %v424_v59  ;;  %v3104_v43 = vadd.f32 %v2921_v10, %v363_v14  ;;  %v588_v44 = vmul.f32 0.7978846, %v556_v37  ;;  %v526_v28 = vmul.f32 0.044715, %v494_v29 }
  0x44   : > { %805 = vrot.lane.b32.xlu1 %v3087_v19, %s2845_s6  ;;  %v3107_v48 = vadd.f32 %v2921_v10, %v364_v40  ;;  %v329_v49 = vunpack.c.l.bf16 %v3095_v30  ;;  %v425_v51 = vmul.f32 0.5, %v3012_v34  ;;  %2711 = vtanh.f32 %v587_v41 }
  0x45   : > { %v706_v50 = vpack.c.bf16 %v680_v32, %v679_v46  ;;  %v557_v52 = vadd.f32 %v525_v42, %v3065_v62  ;;  %v426_v54 = vmul.f32 0.5, %v3017_v60  ;;  %2713 = vtanh.f32 %v588_v44 }
  0x46   : > { %803 = vrot.lane.b32.xlu0 %v3079_v9, %s2845_s6  ;;  %v558_v55 = vadd.f32 %v526_v28, %v3073_v6  ;;  %v463_v33 = vmul.f32 %v3104_v43, %v3104_v43  ;;  %v464_v57 = vmul.f32 %v3107_v48, %v3107_v48  ;;  %v330_v34 = vunpack.c.h.bf16 %v3095_v30 }
  0x47   : > { %723 = vst.msk [vmem:[#allocation2 + $0x30] sm:$0xff] %vm301_vm0, %v706_v50  ;;  %v589_v56 = vmul.f32 0.7978846, %v557_v52  ;;  %v365_v58 = vmul.f32 %v2912_v1, %v329_v49  ;;  %v331_v60 = vunpack.c.l.bf16 %v3115_v53  ;;  %v332_v61 = vunpack.c.h.bf16 %v3115_v53 }
  0x48   : > { %v590_v24 = vmul.f32 0.7978846, %v558_v55  ;;  %v495_v59 = vmul.f32 %v463_v33, %v3104_v43  ;;  %v496_v3 = vmul.f32 %v464_v57, %v3107_v48  ;;  %v366_v4 = vmul.f32 %v2912_v1, %v330_v34 }
  0x49   : > { %v2708_v63 = vpop.eup %2707  ;;  %2715 = vtanh.f32 %v589_v56  ;;  %v3134_v5 = vadd.f32 %v2921_v10, %v365_v58  ;;  %v367_v11 = vmul.f32 %v2912_v1, %v331_v60  ;;  %v427_v13 = vmul.f32 0.5, %v3048_v39 }
  0x4a   : > { %851 = vrot.lane.b32.xlu0 %v3087_v19, %s2844_s30  ;;  %v2710_v38 = vpop.eup %2709  ;;  %v3136_v27 = vld [vmem:[#allocation2 + $0x28] sm:$0xff]  ;;  %v649_v7 = vadd.f32 1.0, %v2708_v63  ;;  %2717 = vtanh.f32 %v590_v24  ;;  %v527_v8 = vmul.f32 0.044715, %v495_v59  ;;  %v528_v14 = vmul.f32 0.044715, %v496_v3 }
  0x4b   : > { %853 = vrot.lane.b32.xlu1 %v3136_v27, %s2844_s30  ;;  %v650_v12 = vadd.f32 1.0, %v2710_v38  ;;  %v3143_v15 = vadd.f32 %v2921_v10, %v366_v4  ;;  %v465_v17 = vmul.f32 %v3134_v5, %v3134_v5  ;;  %v368_v18 = vmul.f32 %v2912_v1, %v332_v61 }
  0x4c   : > { %v681_v16 = vmul.f32 %v649_v7, %v425_v51  ;;  %v559_v35 = vadd.f32 %v527_v8, %v3104_v43  ;;  %v428_v39 = vmul.f32 0.5, %v3055_v23  ;;  %v560_v45 = vadd.f32 %v528_v14, %v3107_v48  ;;  %v3188_v8 = vld [vmem:[%s2907_s25 + $0x68] sm:$0xff]  }
  0x4d   : > { %v682_v20 = vmul.f32 %v650_v12, %v426_v54  ;;  %v466_v21 = vmul.f32 %v3143_v15, %v3143_v15  ;;  %v497_v26 = vmul.f32 %v465_v17, %v3134_v5  ;;  %v3162_v46 = vadd.f32 %v2921_v10, %v367_v11 }
  0x4e   : > { %807 = vrot.lane.b32.xlu0 %v3136_v27, %s2845_s6  ;;  %v3158_v22 = vld [vmem:[#allocation2 + $0x30] sm:$0xff]  ;;  %v591_v25 = vmul.f32 0.7978846, %v559_v35  ;;  %v3165_v37 = vadd.f32 %v2921_v10, %v368_v18  ;;  %v2712_v29 = vpop.eup %2711  ;;  %v592_v40 = vmul.f32 0.7978846, %v560_v45  ;;  %v333_v41 = vunpack.c.l.bf16 %v3150_v36 }
  0x4f   : > { %809 = vrot.lane.b32.xlu1 %v3158_v22, %s2845_s6  ;;  %v707_v23 = vpack.c.bf16 %v682_v20, %v681_v16  ;;  %v498_v32 = vmul.f32 %v466_v21, %v3143_v15  ;;  %v2714_v42 = vpop.eup %2713  ;;  %v651_v44 = vadd.f32 1.0, %v2712_v29  ;;  %v429_v28 = vmul.f32 0.5, %v3065_v62  ;;  %v3204_v21 = vld [vmem:[%s2907_s25 + $0x70] sm:$0xff]  }
  0x50   : > { %2719 = vtanh.f32 %v591_v25  ;;  %v529_v49 = vmul.f32 0.044715, %v497_v26  ;;  %v652_v50 = vadd.f32 1.0, %v2714_v42  ;;  %v430_v51 = vmul.f32 0.5, %v3073_v6 }
  0x51   : > { %724 = vst.msk [vmem:[#allocation2 + $0x38] sm:$0xff] %vm301_vm0, %v707_v23  ;;  %2721 = vtanh.f32 %v592_v40  ;;  %v530_v52 = vmul.f32 0.044715, %v498_v32  ;;  %v683_v54 = vmul.f32 %v651_v44, %v427_v13  ;;  %v467_v33 = vmul.f32 %v3162_v46, %v3162_v46 }
  0x52   : > { %855 = vrot.lane.b32.xlu0 %v3158_v22, %s2844_s30  ;;  %v561_v55 = vadd.f32 %v529_v49, %v3134_v5  ;;  %v468_v62 = vmul.f32 %v3165_v37, %v3165_v37  ;;  %v684_v57 = vmul.f32 %v652_v50, %v428_v39  ;;  %v334_v58 = vunpack.c.h.bf16 %v3150_v36 }
  0x53   : > { %v2716_v56 = vpop.eup %2715  ;;  %v562_v34 = vadd.f32 %v530_v52, %v3143_v15  ;;  %v369_v6 = vmul.f32 %v2912_v1, %v333_v41  ;;  %v499_v61 = vmul.f32 %v467_v33, %v3162_v46  ;;  %v335_v39 = vunpack.c.l.bf16 %v3188_v8 }
  0x54   : > { %v2718_v24 = vpop.eup %2717  ;;  %v653_v59 = vadd.f32 1.0, %v2716_v56  ;;  %v593_v60 = vmul.f32 0.7978846, %v561_v55  ;;  %v500_v63 = vmul.f32 %v468_v62, %v3165_v37  ;;  %v708_v3 = vpack.c.bf16 %v684_v57, %v683_v54 }
  0x55   : > { %v654_v4 = vadd.f32 1.0, %v2718_v24  ;;  %v594_v38 = vmul.f32 0.7978846, %v562_v34  ;;  %v370_v7 = vmul.f32 %v2912_v1, %v334_v58  ;;  %v531_v12 = vmul.f32 0.044715, %v499_v61 }
  0x56   : > { %v685_v11 = vmul.f32 %v653_v59, %v429_v28  ;;  %2723 = vtanh.f32 %v593_v60  ;;  %v532_v13 = vmul.f32 0.044715, %v500_v63  ;;  %725 = vst.msk [vmem:[#allocation2 + $0x40] sm:$0xff] %vm301_vm0, %v708_v3  ;;  %v3192_v16 = vadd.f32 %v2921_v10, %v369_v6 }
  0x57   : > { %v686_v14 = vmul.f32 %v654_v4, %v430_v51  ;;  %2725 = vtanh.f32 %v594_v38  ;;  %v3195_v35 = vadd.f32 %v2921_v10, %v370_v7  ;;  %v563_v18 = vadd.f32 %v531_v12, %v3162_v46 }
  0x58   : > { %v3197_v17 = vld [vmem:[#allocation2 + $0x38] sm:$0xff]  ;;  %v564_v20 = vadd.f32 %v532_v13, %v3165_v37  ;;  %v336_v45 = vunpack.c.h.bf16 %v3188_v8  ;;  %v431_v26 = vmul.f32 0.5, %v3104_v43  ;;  %v432_v29 = vmul.f32 0.5, %v3107_v48 }
  0x59   : > { %857 = vrot.lane.b32.xlu1 %v3197_v17, %s2844_s30  ;;  %811 = vrot.lane.b32.xlu0 %v3197_v17, %s2845_s6  ;;  %v709_v25 = vpack.c.bf16 %v686_v14, %v685_v11  ;;  %v469_v23 = vmul.f32 %v3192_v16, %v3192_v16  ;;  %v595_v32 = vmul.f32 0.7978846, %v563_v18  ;;  %v470_v42 = vmul.f32 %v3195_v35, %v3195_v35 }
  0x5a   : > { %v2720_v40 = vpop.eup %2719  ;;  %v596_v41 = vmul.f32 0.7978846, %v564_v20  ;;  %v371_v44 = vmul.f32 %v2912_v1, %v335_v39  ;;  %v372_v43 = vmul.f32 %v2912_v1, %v336_v45  ;;  %v337_v48 = vunpack.c.l.bf16 %v3204_v21 }
  0x5b   : > { %v2722_v28 = vpop.eup %2721  ;;  %726 = vst.msk [vmem:[#allocation2 + $0x48] sm:$0xff] %vm301_vm0, %v709_v25  ;;  %v655_v49 = vadd.f32 1.0, %v2720_v40  ;;  %v501_v50 = vmul.f32 %v469_v23, %v3192_v16  ;;  %2727 = vtanh.f32 %v595_v32  ;;  %v502_v52 = vmul.f32 %v470_v42, %v3195_v35  ;;  %v3261_v23 = vld [vmem:[%s2907_s25 + $0x78] sm:$0xff]  }
  0x5c   : > { %v656_v51 = vadd.f32 1.0, %v2722_v28  ;;  %v3223_v54 = vadd.f32 %v2921_v10, %v371_v44  ;;  %2729 = vtanh.f32 %v596_v41  ;;  %v3226_v62 = vadd.f32 %v2921_v10, %v372_v43 }
  0x5d   : > { %v687_v55 = vmul.f32 %v655_v49, %v431_v26  ;;  %v533_v33 = vmul.f32 0.044715, %v501_v50  ;;  %v3228_v56 = vld [vmem:[#allocation2 + $0x40] sm:$0xff]  ;;  %v433_v34 = vmul.f32 0.5, %v3134_v5  ;;  %v534_v58 = vmul.f32 0.044715, %v502_v52 }
  0x5e   : > { %v688_v57 = vmul.f32 %v656_v51, %v432_v29  ;;  %v471_v6 = vmul.f32 %v3223_v54, %v3223_v54  ;;  %813 = vrot.lane.b32.xlu1 %v3228_v56, %s2845_s6  ;;  %859 = vrot.lane.b32.xlu0 %v3228_v56, %s2844_s30  ;;  %v434_v24 = vmul.f32 0.5, %v3143_v15  ;;  %v472_v60 = vmul.f32 %v3226_v62, %v3226_v62 }
  0x5f   : > { %v565_v59 = vadd.f32 %v533_v33, %v3192_v16  ;;  %v338_v61 = vunpack.c.h.bf16 %v3204_v21  ;;  %v566_v3 = vadd.f32 %v534_v58, %v3195_v35  ;;  %v373_v38 = vmul.f32 %v2912_v1, %v337_v48 }
  0x60   : > { %v2724_v5 = vpop.eup %2723  ;;  %v710_v63 = vpack.c.bf16 %v688_v57, %v687_v55  ;;  %v503_v4 = vmul.f32 %v471_v6, %v3223_v54  ;;  %v504_v15 = vmul.f32 %v472_v60, %v3226_v62  ;;  %v435_v32 = vmul.f32 0.5, %v3162_v46 }
  0x61   : > { %v2726_v7 = vpop.eup %2725  ;;  %v657_v11 = vadd.f32 1.0, %v2724_v5  ;;  %v597_v12 = vmul.f32 0.7978846, %v565_v59  ;;  %v374_v13 = vmul.f32 %v2912_v1, %v338_v61  ;;  %v598_v20 = vmul.f32 0.7978846, %v566_v3 }
  0x62   : > { %v3247_v14 = vld [vmem:[#allocation2 + $0x48] sm:$0xff]  ;;  %727 = vst.msk [vmem:[#allocation2 + $0x50] sm:$0xff] %vm301_vm0, %v710_v63  ;;  %v658_v18 = vadd.f32 1.0, %v2726_v7  ;;  %v535_v39 = vmul.f32 0.044715, %v503_v4  ;;  %v3251_v45 = vadd.f32 %v2921_v10, %v373_v38  ;;  %v436_v42 = vmul.f32 0.5, %v3165_v37 }
  0x63   : > { %861 = vrot.lane.b32.xlu1 %v3247_v14, %s2844_s30  ;;  %815 = vrot.lane.b32.xlu0 %v3247_v14, %s2845_s6  ;;  %v689_v25 = vmul.f32 %v657_v11, %v433_v34  ;;  %2731 = vtanh.f32 %v597_v12  ;;  %v536_v26 = vmul.f32 0.044715, %v504_v15  ;;  %v3258_v29 = vadd.f32 %v2921_v10, %v374_v13  ;;  %v2664_v34 = vld [vmem:[%s3960_s2] sm:$0x3f]  }
  0x64   : > { %v690_v40 = vmul.f32 %v658_v18, %v434_v24  ;;  %2733 = vtanh.f32 %v598_v20  ;;  %v567_v41 = vadd.f32 %v535_v39, %v3223_v54  ;;  %v473_v28 = vmul.f32 %v3251_v45, %v3251_v45  ;;  %2632 = vmatprep.subr.msk.bf16.mxu0 %vm1003_vm1, %v2664_v34 }
  0x65   : > { %v568_v44 = vadd.f32 %v536_v26, %v3226_v62  ;;  %v474_v49 = vmul.f32 %v3258_v29, %v3258_v29  ;;  %v2728_v50 = vpop.eup %2727  ;;  %v339_v51 = vunpack.c.l.bf16 %v3261_v23  ;;  %v340_v46 = vunpack.c.h.bf16 %v3261_v23 }
  0x66   : > { %v711_v43 = vpack.c.bf16 %v690_v40, %v689_v25  ;;  %v599_v48 = vmul.f32 0.7978846, %v567_v41  ;;  %v2730_v52 = vpop.eup %2729  ;;  %v659_v55 = vadd.f32 1.0, %v2728_v50  ;;  %v505_v37 = vmul.f32 %v473_v28, %v3251_v45 }
  0x67   : > { %v600_v33 = vmul.f32 0.7978846, %v568_v44  ;;  %v506_v57 = vmul.f32 %v474_v49, %v3258_v29  ;;  %v660_v58 = vadd.f32 1.0, %v2730_v52  ;;  %v375_v6 = vmul.f32 %v2912_v1, %v339_v51 }
  0x68   : > { %728 = vst.msk [vmem:[#allocation2 + $0x58] sm:$0xff] %vm301_vm0, %v711_v43  ;;  %2735 = vtanh.f32 %v599_v48  ;;  %v376_v24 = vmul.f32 %v2912_v1, %v340_v46  ;;  %v691_v60 = vmul.f32 %v659_v55, %v435_v32  ;;  %v537_v61 = vmul.f32 0.044715, %v505_v37 }
  0x69   : > { %v3281_v59 = vld [vmem:[#allocation2 + $0x50] sm:$0xff]  ;;  %2737 = vtanh.f32 %v600_v33  ;;  %v538_v5 = vmul.f32 0.044715, %v506_v57  ;;  %v692_v63 = vmul.f32 %v660_v58, %v436_v42  ;;  %v3288_v3 = vadd.f32 %v2921_v10, %v375_v6 }
  0x6a   : > { %817 = vrot.lane.b32.xlu1 %v3281_v59, %s2845_s6  ;;  %863 = vrot.lane.b32.xlu0 %v3281_v59, %s2844_s30  ;;  %v3291_v4 = vadd.f32 %v2921_v10, %v376_v24  ;;  %v569_v1 = vadd.f32 %v537_v61, %v3251_v45  ;;  %v437_v11 = vmul.f32 0.5, %v3192_v16  ;;  %v438_v12 = vmul.f32 0.5, %v3195_v35 }
  0x6b   : > { %v570_v38 = vadd.f32 %v538_v5, %v3258_v29  ;;  %v712_v7 = vpack.c.bf16 %v692_v63, %v691_v60  ;;  %v475_v15 = vmul.f32 %v3288_v3, %v3288_v3  ;;  %v1005_v39 = vsel %vm1003_vm1, %v2664_v34, 0 }
  0x6c   : > { %v601_v13 = vmul.f32 0.7978846, %v569_v1  ;;  %v476_v20 = vmul.f32 %v3291_v4, %v3291_v4  ;;  %2495 = vmatpush3.bf16.msra.mxu0 %v1005_v39  ;;  %v439_v44 = vmul.f32 0.5, %v3223_v54  ;;  %v440_v50 = vmul.f32 0.5, %v3226_v62 }
  0x6d   : > { %v2732_v10 = vpop.eup %2731  ;;  %v602_v18 = vmul.f32 0.7978846, %v570_v38  ;;  %729 = vst.msk [vmem:[#allocation2 + $0x60] sm:$0xff] %vm301_vm0, %v712_v7  ;;  %v507_v35 = vmul.f32 %v475_v15, %v3288_v3  ;;  %v441_v58 = vmul.f32 0.5, %v3251_v45  ;;  %v442_v24 = vmul.f32 0.5, %v3258_v29 }
  0x6e   : > { %v2734_v25 = vpop.eup %2733  ;;  %v661_v16 = vadd.f32 1.0, %v2732_v10  ;;  %2739 = vtanh.f32 %v601_v13  ;;  %v508_v0 = vmul.f32 %v476_v20, %v3291_v4  ;;  %v443_v45 = vmul.f32 0.5, %v3288_v3 }
  0x6f   : > { %v3307_v26 = vld [vmem:[#allocation2 + $0x58] sm:$0xff]  ;;  %v662_v40 = vadd.f32 1.0, %v2734_v25  ;;  %2741 = vtanh.f32 %v602_v18  ;;  %v539_v41 = vmul.f32 0.044715, %v507_v35  ;;  %v444_v29 = vmul.f32 0.5, %v3291_v4  ;;  %v782_v25 = vld [vmem:[#allocation2 + $0x88] sm:$0xff] }
  0x70   : > { %865 = vrot.lane.b32.xlu1 %v3307_v26, %s2844_s30  ;;  %819 = vrot.lane.b32.xlu0 %v3307_v26, %s2845_s6  ;;  %v693_v32 = vmul.f32 %v661_v16, %v437_v11  ;;  %v540_v28 = vmul.f32 0.044715, %v508_v0  ;;  %v734_v35 = vld [vmem:[#allocation2] sm:$0xff] }
  0x71   : > { %v694_v42 = vmul.f32 %v662_v40, %v438_v12  ;;  %v571_v43 = vadd.f32 %v539_v41, %v3288_v3 }
  0x72   : > { %v2736_v49 = vpop.eup %2735  ;;  %v572_v52 = vadd.f32 %v540_v28, %v3291_v4 }
  0x73   : > { %v2738_v48 = vpop.eup %2737  ;;  %v713_v51 = vpack.c.bf16 %v694_v42, %v693_v32  ;;  %v663_v46 = vadd.f32 1.0, %v2736_v49  ;;  %v603_v33 = vmul.f32 0.7978846, %v571_v43  ;;  %v736_v43 = vld [vmem:[#allocation2 + $0x10] sm:$0xff] }
  0x74   : > { %v664_v55 = vadd.f32 1.0, %v2738_v48  ;;  %v3318_v37 = vld [vmem:[#allocation2 + $0x60] sm:$0xff]  ;;  %v604_v34 = vmul.f32 0.7978846, %v572_v52 }
  0x75   : > { %730 = vst.msk [vmem:[#allocation2 + $0x68] sm:$0xff] %vm301_vm0, %v713_v51  ;;  %v695_v57 = vmul.f32 %v663_v46, %v439_v44  ;;  %821 = vrot.lane.b32.xlu1 %v3318_v37, %s2845_s6  ;;  %867 = vrot.lane.b32.xlu0 %v3318_v37, %s2844_s30  ;;  %2743 = vtanh.f32 %v603_v33 }
  0x76   : > { %v696_v54 = vmul.f32 %v664_v55, %v440_v50  ;;  %2745 = vtanh.f32 %v604_v34 }
  0x78   : > { %v714_v62 = vpack.c.bf16 %v696_v54, %v695_v57  ;;  %v2740_v6 = vpop.eup %2739 }
  0x79   : > { %v2742_v60 = vpop.eup %2741  ;;  %v665_v61 = vadd.f32 1.0, %v2740_v6 }
  0x7a   : > { %731 = vst.msk [vmem:[#allocation2 + $0x70] sm:$0xff] %vm301_vm0, %v714_v62  ;;  %v666_v5 = vadd.f32 1.0, %v2742_v60 }
  0x7b   : > { %v697_v1 = vmul.f32 %v665_v61, %v441_v58 }
  0x7c   : > { %v3328_v63 = vld [vmem:[#allocation2 + $0x68] sm:$0xff]  ;;  %v698_v38 = vmul.f32 %v666_v5, %v442_v24 }
  0x7d   : > { %869 = vrot.lane.b32.xlu1 %v3328_v63, %s2844_s30  ;;  %823 = vrot.lane.b32.xlu0 %v3328_v63, %s2845_s6 }
  0x7e   : > { %v715_v7 = vpack.c.bf16 %v698_v38, %v697_v1 }
  0x7f   : > { %v2744_v11 = vpop.eup %2743 }
  0x80   : > { %v2746_v12 = vpop.eup %2745  ;;  %732 = vst.msk [vmem:[#allocation2 + $0x78] sm:$0xff] %vm301_vm0, %v715_v7  ;;  %v667_v10 = vadd.f32 1.0, %v2744_v11 }
  0x81   : > { %v3336_v15 = vld [vmem:[#allocation2 + $0x70] sm:$0xff]  ;;  %v668_v13 = vadd.f32 1.0, %v2746_v12 }
  0x82   : > { %825 = vrot.lane.b32.xlu1 %v3336_v15, %s2845_s6  ;;  %871 = vrot.lane.b32.xlu0 %v3336_v15, %s2844_s30  ;;  %v699_v18 = vmul.f32 %v667_v10, %v443_v45 }
  0x83   : > { %v700_v20 = vmul.f32 %v668_v13, %v444_v29 }
  0x85   : > { %v716_v39 = vpack.c.bf16 %v700_v20, %v699_v18 }
  0x87   : > { %v3343_v3 = vld [vmem:[#allocation2 + $0x78] sm:$0xff]  ;;  %733 = vst.msk [vmem:[#allocation2 + $0x80] sm:$0xff] %vm301_vm0, %v716_v39 }
  0x88   : > { %873 = vrot.lane.b32.xlu1 %v3343_v3, %s2844_s30  ;;  %827 = vrot.lane.b32.xlu0 %v3343_v3, %s2845_s6 }
  0x8e   : > { %v765_v4 = vld [vmem:[#allocation2 + $0x80] sm:$0xff] }
  0x8f   : > { %829 = vrot.lane.b32.xlu1 %v765_v4, %s2845_s6  ;;  %875 = vrot.lane.b32.xlu0 %v765_v4, %s2844_s30 }
  0x93   : > { %877 = vrot.lane.b32.xlu1 %v782_v25, %s2844_s30 }
  0xae   : > { %v848_v16 = vpop.permute.xlu1 %847 }
  0xb0   : > { %v800_v40 = vpop.permute.xlu0 %799 }
  0xb1   : > { %v881_v0 = vsel %vm301_vm0, %v734_v35, %v800_v40 }
  0xb2   : > { %v928_v32 = vsel %vm305_vm2, %v881_v0, %v848_v16  ;;  %v850_v41 = vpop.permute.xlu1 %849 }
  0xb3   : > { %2496 = vmatprep.mubr.msk.bf16.mxu0 %vm970_vm3, %v928_v32 }
  0xb4   : > { %v802_v42 = vpop.permute.xlu0 %801 }
  0xb5   : > { %v884_v44 = vsel %vm301_vm0, %v3067_v2, %v802_v42 }
  0xb6   : > { %v930_v28 = vsel %vm305_vm2, %v884_v44, %v850_v41  ;;  %v806_v49 = vpop.permute.xlu1 %805 }
  0xb7   : > { %2497 = vmatmul.mubr.msk.bf16.vlgmr.msra.gmra.mrb[0].mxu0 %vm970_vm3, %v930_v28  ;;  %v890_v52 = vsel %vm301_vm0, %v3079_v9, %v806_v49 }
  0xb8   : > { %v804_v50 = vpop.permute.xlu0 %803 }
  0xb9   : > { %v887_v48 = vsel %vm301_vm0, %v736_v43, %v804_v50 }
  0xbc   : > { %v852_v51 = vpop.permute.xlu0 %851 }
  0xbd   : > { %v932_v46 = vsel %vm305_vm2, %v887_v48, %v852_v51  ;;  %v854_v55 = vpop.permute.xlu1 %853  ;;  %v3418_v48 = vld [vmem:[%s3959_s1 + $0x2] ss:$0 sm:$0xff] }
  0xbe   : > { %2500 = vmatprep.mubr.msk.bf16.mxu0 %vm970_vm3, %v932_v46  ;;  %v934_v2 = vsel %vm305_vm2, %v890_v52, %v854_v55 }
  0xbf   : > { %2501 = vmatmul.mubr.msk.bf16.gmra.mrb[4].mxu0 %vm970_vm3, %v934_v2 }
  0xc0   : > { %v808_v33 = vpop.permute.xlu0 %807 }
  0xc1   : > { %v893_v57 = vsel %vm301_vm0, %v3087_v19, %v808_v33  ;;  %v810_v62 = vpop.permute.xlu1 %809 }
  0xc2   : > { %v896_v9 = vsel %vm301_vm0, %v3136_v27, %v810_v62 }
  0xc4   : > { %v856_v34 = vpop.permute.xlu0 %855 }
  0xc5   : > { %v936_v54 = vsel %vm305_vm2, %v893_v57, %v856_v34 }
  0xc6   : > { %2504 = vmatprep.mubr.msk.bf16.mxu0 %vm970_vm3, %v936_v54 }
  0xcb   : > { %v858_v58 = vpop.permute.xlu1 %857  ;;  %v812_v6 = vpop.permute.xlu0 %811 }
  0xcc   : > { %v938_v24 = vsel %vm305_vm2, %v896_v9, %v858_v58  ;;  %v899_v61 = vsel %vm301_vm0, %v3158_v22, %v812_v6 }
  0xcd   : > { %2505 = vmatmul.mubr.msk.bf16.gmra.mrb[8].mxu0 %vm970_vm3, %v938_v24 }
  0xd0   : > { %v814_v60 = vpop.permute.xlu1 %813  ;;  %v860_v19 = vpop.permute.xlu0 %859 }
  0xd1   : > { %v940_v5 = vsel %vm305_vm2, %v899_v61, %v860_v19  ;;  %v902_v1 = vsel %vm301_vm0, %v3197_v17, %v814_v60  ;;  %v1718_v60 = vld [vmem:[%s3962_s4] sm:$0x3] }
  0xd2   : > { %2508 = vmatprep.mubr.msk.bf16.mxu0 %vm970_vm3, %v940_v5  ;;  %v2665_v61 = vld [vmem:[%s3961_s3] sm:$0xff]   ;;  %2634 = vmatprep.subr.msk.bf16.mxu1 %vm1847_vm4, %v1718_v60 }
  0xd3   : > { %2633 = vmatprep.subr.msk.bf16.mxu0 %vm1847_vm4, %v1718_v60 }
  0xd5   : > { %v862_v38 = vpop.permute.xlu1 %861  ;;  %v816_v7 = vpop.permute.xlu0 %815 }
  0xd6   : > { %v942_v27 = vsel %vm305_vm2, %v902_v1, %v862_v38  ;;  %v905_v11 = vsel %vm301_vm0, %v3228_v56, %v816_v7  ;;  %v1849_v1 = vsel %vm1847_vm4, %v1718_v60, 0 }
  0xd7   : > { %2509 = vmatmul.mubr.msk.bf16.gmra.mrb[12].mxu0 %vm970_vm3, %v942_v27  ;;  %2599 = vmatpush3.bf16.msra.mxu1 %v1849_v1 }
  0xd8   : > { %2529 = vmatpush3.bf16.msra.mxu0 %v1849_v1  ;;  %2562 = vmatprep.subr.bf16.mxu1 %v2665_v61 }
  0xda   : > { %2547 = vmatmul.mubr.msk.bf16.vlgmr.msra.gmra.mrb[0].mxu1 %vm301_vm0, %v3042_v47 }
  0xdb   : > { %2563 = vmatpush3.bf16.msra.mxu1 %v2665_v61  ;;  %2550 = vmatprep.mubr.msk.bf16.mxu1 %vm301_vm0, %v3095_v30 }
  0xdc   : > { %v818_v45 = vpop.permute.xlu1 %817  ;;  %v864_v29 = vpop.permute.xlu0 %863 }
  0xdd   : > { %v944_v22 = vsel %vm305_vm2, %v905_v11, %v864_v29  ;;  %v908_v12 = vsel %vm301_vm0, %v3247_v14, %v818_v45 }
  0xde   : > { %2512 = vmatprep.mubr.msk.bf16.mxu0 %vm970_vm3, %v944_v22 }
  0xe2   : > { %v866_v10 = vpop.permute.xlu1 %865  ;;  %v820_v17 = vpop.permute.xlu0 %819  ;;  %2551 = vmatmul.mubr.msk.bf16.gmra.mrb[4].mxu1 %vm301_vm0, %v3115_v53 }
  0xe3   : > { %v946_v13 = vsel %vm305_vm2, %v908_v12, %v866_v10  ;;  %v911_v18 = vsel %vm301_vm0, %v3281_v59, %v820_v17  ;;  %v2666_v12 = vld [vmem:[%s3961_s3 + $0x8] ss:$0 sps:$4 sm:$0xff]   ;;  %2554 = vmatprep.mubr.msk.bf16.mxu1 %vm301_vm0, %v3150_v36 }
  0xe4   : > { %2513 = vmatmul.mubr.msk.bf16.gmra.mrb[16].mxu0 %vm970_vm3, %v946_v13  ;;  %2635 = vmatprep.subr.msk.bf16.mxu1 %vm2054_vm5, %v2666_v12 }
  0xe7   : > { %v868_v20 = vpop.permute.xlu0 %867  ;;  %v822_v39 = vpop.permute.xlu1 %821 }
  0xe8   : > { %v948_v56 = vsel %vm305_vm2, %v911_v18, %v868_v20  ;;  %v914_v4 = vsel %vm301_vm0, %v3307_v26, %v822_v39 }
  0xe9   : > { %2516 = vmatprep.mubr.msk.bf16.mxu0 %vm970_vm3, %v948_v56 }
  0xea   : > { %2555 = vmatmul.mubr.msk.bf16.gmra.mrb[8].mxu1 %vm301_vm0, %v3188_v8 }
  0xeb   : > { %2558 = vmatprep.mubr.msk.bf16.mxu1 %vm301_vm0, %v3204_v21 }
  0xef   : > { %v870_v25 = vpop.permute.xlu1 %869  ;;  %v824_v14 = vpop.permute.xlu0 %823 }
  0xf0   : > { %v950_v16 = vsel %vm305_vm2, %v914_v4, %v870_v25  ;;  %v917_v35 = vsel %vm301_vm0, %v3318_v37, %v824_v14 }
  0xf1   : > { %2517 = vmatmul.mubr.msk.bf16.gmra.mrb[20].mxu0 %vm970_vm3, %v950_v16 }
  0xf2   : > { %2559 = vmatmul.mubr.msk.bf16.gmra.mrb[12].mxu1 %vm301_vm0, %v3261_v23 }
  0xf4   : > { %v872_v40 = vpop.permute.xlu0 %871  ;;  %v826_v59 = vpop.permute.xlu1 %825 }
  0xf5   : > { %v952_v0 = vsel %vm305_vm2, %v917_v35, %v872_v40  ;;  %v920_v32 = vsel %vm301_vm0, %v3328_v63, %v826_v59 }
  0xf6   : > { %2520 = vmatprep.mubr.msk.bf16.mxu0 %vm970_vm3, %v952_v0 }
  0xfa   : > { %v874_v41 = vpop.permute.xlu1 %873  ;;  %v828_v42 = vpop.permute.xlu0 %827 }
  0xfb   : > { %v954_v26 = vsel %vm305_vm2, %v920_v32, %v874_v41  ;;  %v923_v28 = vsel %vm301_vm0, %v3336_v15, %v828_v42  ;;  %v2056_v41 = vsel %vm2054_vm5, %v2666_v12, 0 }
  0xfc   : > { %2521 = vmatmul.mubr.msk.bf16.gmra.mrb[24].mxu0 %vm970_vm3, %v954_v26  ;;  %2565 = vmatpush3.bf16.msra.mxu1 %v2056_v41 }
 0x101   : > { %v830_v44 = vpop.permute.xlu1 %829  ;;  %v876_v37 = vpop.permute.xlu0 %875 }
 0x102   : > { %v956_v49 = vsel %vm305_vm2, %v923_v28, %v876_v37  ;;  %v926_v50 = vsel %vm301_vm0, %v3343_v3, %v830_v44 }
 0x103   : > { %2524 = vmatprep.mubr.msk.bf16.mxu0 %vm970_vm3, %v956_v49 }
 0x105   : > { %v878_v43 = vpop.permute.xlu1 %877 }
 0x106   : > { %v958_v63 = vsel %vm305_vm2, %v926_v50, %v878_v43 }
 0x107   : > { %2525 = vmatmul.mubr.msk.bf16.gmra.mrb[28].mxu0 %vm970_vm3, %v958_v63 }
 0x18a   : > { %v2498_v51 = vpop.f32.mrb[0].mxu0 }
 0x18b   : > { %v3421_v15 = vadd.f32 %v2498_v51, %v3418_v48  ;;  %v1041_v46 = vpop.f32.mrb[1].mxu0 }
 0x18c   : > { %v3424_v52 = vadd.f32 %v3418_v48, %v1041_v46  ;;  %v2499_v55 = vpop.f32.mrb[2].mxu0 }
 0x18d   : > { %v1202_v3 = vmul.f32 %v3421_v15, %v3421_v15  ;;  %v3429_v2 = vadd.f32 %v2499_v55, %v3418_v48  ;;  %v1044_v33 = vpop.f32.mrb[3].mxu0  ;;  %v1170_v46 = vmul.f32 0.5, %v3421_v15 }
 0x18e   : > { %v1200_v57 = vmul.f32 %v3424_v52, %v3424_v52  ;;  %v3434_v34 = vadd.f32 %v3418_v48, %v1044_v33  ;;  %v1168_v36 = vmul.f32 0.5, %v3424_v52 }
 0x18f   : > { %v1234_v54 = vmul.f32 %v1202_v3, %v3421_v15  ;;  %v1203_v62 = vmul.f32 %v3429_v2, %v3429_v2  ;;  %v1171_v61 = vmul.f32 0.5, %v3429_v2 }
 0x190   : > { %v1232_v9 = vmul.f32 %v1200_v57, %v3424_v52  ;;  %v1201_v58 = vmul.f32 %v3434_v34, %v3434_v34 }
 0x191   : > { %v1266_v6 = vmul.f32 0.044715, %v1234_v54  ;;  %v1235_v24 = vmul.f32 %v1203_v62, %v3429_v2 }
 0x192   : > { %v1264_v19 = vmul.f32 0.044715, %v1232_v9  ;;  %v1233_v5 = vmul.f32 %v1201_v58, %v3434_v34  ;;  %v2502_v7 = vpop.f32.mrb[4].mxu0 }
 0x193   : > { %v1298_v38 = vadd.f32 %v1266_v6, %v3421_v15  ;;  %v1267_v27 = vmul.f32 0.044715, %v1235_v24  ;;  %v3453_v29 = vadd.f32 %v2502_v7, %v3418_v48  ;;  %v1057_v22 = vpop.f32.mrb[5].mxu0 }
 0x194   : > { %v1296_v45 = vadd.f32 %v1264_v19, %v3424_v52  ;;  %v1265_v11 = vmul.f32 0.044715, %v1233_v5  ;;  %v3462_v13 = vadd.f32 %v3418_v48, %v1057_v22  ;;  %v2503_v18 = vpop.f32.mrb[6].mxu0  ;;  %v1169_v5 = vmul.f32 0.5, %v3434_v34 }
 0x195   : > { %v1330_v10 = vmul.f32 0.7978846, %v1298_v38  ;;  %v1299_v17 = vadd.f32 %v1267_v27, %v3429_v2  ;;  %v1206_v56 = vmul.f32 %v3453_v29, %v3453_v29  ;;  %v1060_v31 = vpop.f32.mrb[7].mxu0  ;;  %v3475_v35 = vadd.f32 %v2503_v18, %v3418_v48 }
 0x196   : > { %v1328_v20 = vmul.f32 0.7978846, %v1296_v45  ;;  %v1297_v39 = vadd.f32 %v1265_v11, %v3434_v34  ;;  %v1204_v25 = vmul.f32 %v3462_v13, %v3462_v13  ;;  %v3480_v40 = vadd.f32 %v3418_v48, %v1060_v31 }
 0x197   : > { %2747 = vtanh.f32 %v1330_v10  ;;  %v1331_v4 = vmul.f32 0.7978846, %v1299_v17  ;;  %v1238_v16 = vmul.f32 %v1206_v56, %v3453_v29  ;;  %v1207_v30 = vmul.f32 %v3475_v35, %v3475_v35 }
 0x198   : > { %2749 = vtanh.f32 %v1328_v20  ;;  %v1329_v14 = vmul.f32 0.7978846, %v1297_v39  ;;  %v1236_v47 = vmul.f32 %v1204_v25, %v3462_v13  ;;  %v1205_v32 = vmul.f32 %v3480_v40, %v3480_v40 }
 0x199   : > { %2751 = vtanh.f32 %v1331_v4  ;;  %v1270_v59 = vmul.f32 0.044715, %v1238_v16  ;;  %v1239_v42 = vmul.f32 %v1207_v30, %v3475_v35  ;;  %v1174_v31 = vmul.f32 0.5, %v3453_v29 }
 0x19a   : > { %2753 = vtanh.f32 %v1329_v14  ;;  %v1268_v0 = vmul.f32 0.044715, %v1236_v47  ;;  %v1237_v28 = vmul.f32 %v1205_v32, %v3480_v40  ;;  %v1172_v47 = vmul.f32 0.5, %v3462_v13 }
 0x19b   : > { %v1302_v26 = vadd.f32 %v1270_v59, %v3453_v29  ;;  %v1271_v49 = vmul.f32 0.044715, %v1239_v42  ;;  %v1175_v42 = vmul.f32 0.5, %v3475_v35 }
 0x19c   : > { %v1300_v44 = vadd.f32 %v1268_v0, %v3462_v13  ;;  %v1269_v43 = vmul.f32 0.044715, %v1237_v28 }
 0x19d   : > { %v1334_v37 = vmul.f32 0.7978846, %v1302_v26  ;;  %v1303_v63 = vadd.f32 %v1271_v49, %v3475_v35 }
 0x19e   : > { %v1332_v50 = vmul.f32 0.7978846, %v1300_v44  ;;  %v1301_v55 = vadd.f32 %v1269_v43, %v3480_v40  ;;  %v1173_v43 = vmul.f32 0.5, %v3480_v40 }
 0x19f   : > { %2755 = vtanh.f32 %v1334_v37  ;;  %v1335_v54 = vmul.f32 0.7978846, %v1303_v63 }
 0x1a0   : > { %2757 = vtanh.f32 %v1332_v50  ;;  %v2506_v3 = vpop.f32.mrb[8].mxu0  ;;  %v1333_v6 = vmul.f32 0.7978846, %v1301_v55 }
 0x1a1   : > { %v2748_v51 = vpop.eup %2747  ;;  %v3499_v53 = vadd.f32 %v2506_v3, %v3418_v48  ;;  %v1073_v62 = vpop.f32.mrb[9].mxu0  ;;  %2759 = vtanh.f32 %v1335_v54 }
 0x1a2   : > { %v2750_v33 = vpop.eup %2749  ;;  %v1394_v57 = vadd.f32 1.0, %v2748_v51  ;;  %v3503_v24 = vadd.f32 %v3418_v48, %v1073_v62  ;;  %v2507_v15 = vpop.f32.mrb[10].mxu0  ;;  %2761 = vtanh.f32 %v1333_v6 }
 0x1a3   : > { %v2752_v9 = vpop.eup %2751  ;;  %v1392_v58 = vadd.f32 1.0, %v2750_v33  ;;  %v1076_v1 = vpop.f32.mrb[11].mxu0  ;;  %v1210_v52 = vmul.f32 %v3499_v53, %v3499_v53  ;;  %v3512_v22 = vadd.f32 %v2507_v15, %v3418_v48 }
 0x1a4   : > { %v2754_v60 = vpop.eup %2753  ;;  %v1395_v19 = vadd.f32 1.0, %v2752_v9  ;;  %v1426_v38 = vmul.f32 %v1394_v57, %v1170_v46  ;;  %v1208_v11 = vmul.f32 %v3503_v24, %v3503_v24  ;;  %v3518_v12 = vadd.f32 %v3418_v48, %v1076_v1 }
 0x1a5   : > { %v1393_v27 = vadd.f32 1.0, %v2754_v60  ;;  %v1424_v7 = vmul.f32 %v1392_v58, %v1168_v36  ;;  %v1242_v34 = vmul.f32 %v1210_v52, %v3499_v53  ;;  %v1211_v18 = vmul.f32 %v3512_v22, %v3512_v22 }
 0x1a6   : > { %v1427_v45 = vmul.f32 %v1395_v19, %v1171_v61  ;;  %v1240_v17 = vmul.f32 %v1208_v11, %v3503_v24  ;;  %v1209_v56 = vmul.f32 %v3518_v12, %v3518_v12  ;;  %v2811_v11 = vld [vmem:[%s2907_s25] sm:$0xff]  }
 0x1a7   : > { %v1425_v2 = vmul.f32 %v1393_v27, %v1169_v5  ;;  %v1274_v39 = vmul.f32 0.044715, %v1242_v34  ;;  %v1243_v25 = vmul.f32 %v1211_v18, %v3512_v22  ;;  %v2812_v34 = vld [vmem:[%s2907_s25 + $0x8] sm:$0xff]   ;;  %2530 = vmatprep.mubr.msk.bf16.mxu0 %vm301_vm0, %v2811_v11 }
 0x1a8   : > { %v1457_v10 = vpack.c.bf16 %v1427_v45, %v1426_v38  ;;  %v1272_v4 = vmul.f32 0.044715, %v1240_v17  ;;  %v1241_v30 = vmul.f32 %v1209_v56, %v3518_v12  ;;  %2531 = vmatmul.mubr.msk.bf16.vlgmr.msra.gmra.mrb[32].mxu0 %vm301_vm0, %v2812_v34 }
 0x1a9   : > { %v1456_v20 = vpack.c.bf16 %v1425_v2, %v1424_v7  ;;  %v2756_v8 = vpop.eup %2755  ;;  %v1306_v59 = vadd.f32 %v1274_v39, %v3499_v53  ;;  %v1275_v41 = vmul.f32 0.044715, %v1243_v25 }
 0x1aa   : > { %1474 = vst.msk [vmem:[#allocation3 + $0x10] sm:$0xff] %vm305_vm2, %v1457_v10  ;;  %v2758_v14 = vpop.eup %2757  ;;  %v1398_v16 = vadd.f32 1.0, %v2756_v8  ;;  %v2510_v0 = vpop.f32.mrb[12].mxu0  ;;  %v1304_v32 = vadd.f32 %v1272_v4, %v3503_v24  ;;  %v1273_v28 = vmul.f32 0.044715, %v1241_v30 }
 0x1ab   : > { %1473 = vst.msk [vmem:[#allocation3 + $0x8] sm:$0xff] %vm305_vm2, %v1456_v20  ;;  %v1396_v21 = vadd.f32 1.0, %v2758_v14  ;;  %v3536_v29 = vadd.f32 %v2510_v0, %v3418_v48  ;;  %v1089_v26 = vpop.f32.mrb[13].mxu0  ;;  %v1338_v44 = vmul.f32 0.7978846, %v1306_v59  ;;  %v2760_v49 = vpop.eup %2759  ;;  %v1307_v51 = vadd.f32 %v1275_v41, %v3512_v22 }
 0x1ac   : > { %v3540_v37 = vadd.f32 %v3418_v48, %v1089_v26  ;;  %v2511_v13 = vpop.f32.mrb[14].mxu0  ;;  %v1430_v50 = vmul.f32 %v1398_v16, %v1174_v31  ;;  %v1336_v63 = vmul.f32 0.7978846, %v1304_v32  ;;  %v2762_v55 = vpop.eup %2761  ;;  %v1399_v3 = vadd.f32 1.0, %v2760_v49 }
 0x1ad   : > { %v1092_v46 = vpop.f32.mrb[15].mxu0  ;;  %2763 = vtanh.f32 %v1338_v44  ;;  %v1305_v35 = vadd.f32 %v1273_v28, %v3518_v12  ;;  %v1214_v33 = vmul.f32 %v3536_v29, %v3536_v29  ;;  %v1428_v57 = vmul.f32 %v1396_v21, %v1172_v47 }
 0x1ae   : > { %v1397_v54 = vadd.f32 1.0, %v2762_v55  ;;  %2765 = vtanh.f32 %v1336_v63  ;;  %v1339_v62 = vmul.f32 0.7978846, %v1307_v51  ;;  %v1431_v40 = vmul.f32 %v1399_v3, %v1175_v42 }
 0x1af   : > { %v1337_v9 = vmul.f32 0.7978846, %v1305_v35  ;;  %v1246_v36 = vmul.f32 %v1214_v33, %v3536_v29  ;;  %v1212_v58 = vmul.f32 %v3540_v37, %v3540_v37  ;;  %v3555_v15 = vadd.f32 %v2511_v13, %v3418_v48 }
 0x1b0   : > { %v1429_v6 = vmul.f32 %v1397_v54, %v1173_v43  ;;  %2767 = vtanh.f32 %v1339_v62  ;;  %v3558_v60 = vadd.f32 %v3418_v48, %v1092_v46  ;;  %v1459_v19 = vpack.c.bf16 %v1431_v40, %v1430_v50 }
 0x1b1   : > { %v3552_v23 = vld [vmem:[#allocation3 + $0x10] sm:$0xff]  ;;  %2769 = vtanh.f32 %v1337_v9  ;;  %v1278_v5 = vmul.f32 0.044715, %v1246_v36  ;;  %v1244_v1 = vmul.f32 %v1212_v58, %v3540_v37  ;;  %v1215_v27 = vmul.f32 %v3555_v15, %v3555_v15 }
 0x1b2   : > { %1556 = vrot.lane.b32.xlu1 %v3552_v23, %s2844_s30  ;;  %v3562_v61 = vld [vmem:[#allocation3 + $0x8] sm:$0xff]  ;;  %v1458_v38 = vpack.c.bf16 %v1429_v6, %v1428_v57  ;;  %1476 = vst.msk [vmem:[#allocation3 + $0x20] sm:$0xff] %vm305_vm2, %v1459_v19  ;;  %v1213_v45 = vmul.f32 %v3558_v60, %v3558_v60  ;;  %v1178_v16 = vmul.f32 0.5, %v3499_v53  ;;  %v1176_v21 = vmul.f32 0.5, %v3503_v24 }
 0x1b3   : > { %1554 = vrot.lane.b32.xlu0 %v3562_v61, %s2844_s30  ;;  %v1310_v52 = vadd.f32 %v1278_v5, %v3536_v29  ;;  %v1276_v7 = vmul.f32 0.044715, %v1244_v1  ;;  %v1247_v2 = vmul.f32 %v1215_v27, %v3555_v15  ;;  %v1179_v32 = vmul.f32 0.5, %v3512_v22  ;;  %v2813_v1 = vld [vmem:[%s2907_s25 + $0x10] sm:$0xff]  }
 0x1b4   : > { %1475 = vst.msk [vmem:[#allocation3 + $0x18] sm:$0xff] %vm305_vm2, %v1458_v38  ;;  %v1245_v18 = vmul.f32 %v1213_v45, %v3558_v60  ;;  %v1177_v28 = vmul.f32 0.5, %v3518_v12  ;;  %2534 = vmatprep.mubr.msk.bf16.mxu0 %vm301_vm0, %v2813_v1  ;;  %v1182_v34 = vmul.f32 0.5, %v3536_v29 }
 0x1b5   : > { %v1342_v10 = vmul.f32 0.7978846, %v1310_v52  ;;  %v1308_v17 = vadd.f32 %v1276_v7, %v3540_v37  ;;  %v1279_v20 = vmul.f32 0.044715, %v1247_v2  ;;  %v2814_v7 = vld [vmem:[%s2907_s25 + $0x18] sm:$0xff]  }
 0x1b6   : > { %v1277_v31 = vmul.f32 0.044715, %v1245_v18  ;;  %2535 = vmatmul.mubr.msk.bf16.gmra.mrb[36].mxu0 %vm301_vm0, %v2814_v7 }
 0x1b7   : > { %1602 = vrot.lane.b32.xlu0 %v3552_v23, %s2846_s17  ;;  %v2514_v39 = vpop.f32.mrb[16].mxu0  ;;  %v2764_v56 = vpop.eup %2763  ;;  %2771 = vtanh.f32 %v1342_v10  ;;  %v1340_v8 = vmul.f32 0.7978846, %v1308_v17  ;;  %v1311_v59 = vadd.f32 %v1279_v20, %v3555_v15 }
 0x1b8   : > { %v3584_v4 = vadd.f32 %v2514_v39, %v3418_v48  ;;  %v1105_v25 = vpop.f32.mrb[17].mxu0  ;;  %v2766_v14 = vpop.eup %2765  ;;  %v1402_v47 = vadd.f32 1.0, %v2764_v56  ;;  %v1309_v41 = vadd.f32 %v1277_v31, %v3558_v60 }
 0x1b9   : > { %v3589_v30 = vadd.f32 %v3418_v48, %v1105_v25  ;;  %v2515_v0 = vpop.f32.mrb[18].mxu0  ;;  %2773 = vtanh.f32 %v1340_v8  ;;  %v1400_v44 = vadd.f32 1.0, %v2766_v14  ;;  %v1343_v53 = vmul.f32 0.7978846, %v1311_v59  ;;  %v3617_v58 = vld [vmem:[#allocation3 + $0x20] sm:$0xff] }
 0x1ba   : > { %v1108_v26 = vpop.f32.mrb[19].mxu0  ;;  %v2768_v42 = vpop.eup %2767  ;;  %v1218_v13 = vmul.f32 %v3584_v4, %v3584_v4  ;;  %v1434_v50 = vmul.f32 %v1402_v47, %v1178_v16  ;;  %v1341_v63 = vmul.f32 0.7978846, %v1309_v41  ;;  %v3603_v55 = vadd.f32 %v2515_v0, %v3418_v48 }
 0x1bb   : > { %v2770_v49 = vpop.eup %2769  ;;  %v1403_v43 = vadd.f32 1.0, %v2768_v42  ;;  %v1216_v24 = vmul.f32 %v3589_v30, %v3589_v30  ;;  %v3599_v22 = vld [vmem:[#allocation3 + $0x18] sm:$0xff]  ;;  %2775 = vtanh.f32 %v1343_v53  ;;  %v3611_v35 = vadd.f32 %v3418_v48, %v1108_v26 }
 0x1bc   : > { %v1401_v51 = vadd.f32 1.0, %v2770_v49  ;;  %v1250_v46 = vmul.f32 %v1218_v13, %v3584_v4  ;;  %1604 = vrot.lane.b32.xlu1 %v3599_v22, %s2846_s17  ;;  %1558 = vrot.lane.b32.xlu0 %v3599_v22, %s2844_s30  ;;  %2777 = vtanh.f32 %v1341_v63  ;;  %v1432_v33 = vmul.f32 %v1400_v44, %v1176_v21 }
 0x1bd   : > { %v1435_v12 = vmul.f32 %v1403_v43, %v1179_v32  ;;  %v1248_v3 = vmul.f32 %v1216_v24, %v3589_v30  ;;  %v1219_v62 = vmul.f32 %v3603_v55, %v3603_v55  ;;  %v1217_v36 = vmul.f32 %v3611_v35, %v3611_v35 }
 0x1be   : > { %v1433_v57 = vmul.f32 %v1401_v51, %v1177_v28  ;;  %v1282_v54 = vmul.f32 0.044715, %v1250_v46  ;;  %v1180_v47 = vmul.f32 0.5, %v3540_v37  ;;  %v1183_v59 = vmul.f32 0.5, %v3555_v15 }
 0x1bf   : > { %v1461_v40 = vpack.c.bf16 %v1435_v12, %v1434_v50  ;;  %v1280_v9 = vmul.f32 0.044715, %v1248_v3  ;;  %v1251_v5 = vmul.f32 %v1219_v62, %v3603_v55  ;;  %v1249_v52 = vmul.f32 %v1217_v36, %v3611_v35  ;;  %v2815_v3 = vld [vmem:[%s2907_s25 + $0x20] sm:$0xff]  }
 0x1c0   : > { %v1460_v6 = vpack.c.bf16 %v1433_v57, %v1432_v33  ;;  %v1314_v19 = vadd.f32 %v1282_v54, %v3584_v4  ;;  %1560 = vrot.lane.b32.xlu1 %v3617_v58, %s2844_s30  ;;  %1606 = vrot.lane.b32.xlu0 %v3617_v58, %s2846_s17  ;;  %v1181_v42 = vmul.f32 0.5, %v3558_v60  ;;  %v2816_v33 = vld [vmem:[%s2907_s25 + $0x28] sm:$0xff]  }
 0x1c1   : > { %v2772_v38 = vpop.eup %2771  ;;  %1478 = vst.msk [vmem:[#allocation3 + $0x30] sm:$0xff] %vm305_vm2, %v1461_v40  ;;  %v1312_v27 = vadd.f32 %v1280_v9, %v3589_v30  ;;  %v1283_v11 = vmul.f32 0.044715, %v1251_v5  ;;  %v1281_v17 = vmul.f32 0.044715, %v1249_v52  ;;  %2538 = vmatprep.mubr.msk.bf16.mxu0 %vm301_vm0, %v2815_v3  ;;  %v1184_v52 = vmul.f32 0.5, %v3589_v30 }
 0x1c2   : > { %1477 = vst.msk [vmem:[#allocation3 + $0x28] sm:$0xff] %vm305_vm2, %v1460_v6  ;;  %v1346_v45 = vmul.f32 0.7978846, %v1314_v19  ;;  %v1406_v20 = vadd.f32 1.0, %v2772_v38  ;;  %v1186_v19 = vmul.f32 0.5, %v3584_v4  ;;  %2539 = vmatmul.mubr.msk.bf16.gmra.mrb[40].mxu0 %vm301_vm0, %v2816_v33 }
 0x1c3   : > { %v2774_v2 = vpop.eup %2773  ;;  %v1344_v10 = vmul.f32 0.7978846, %v1312_v27  ;;  %v1315_v56 = vadd.f32 %v1283_v11, %v3603_v55  ;;  %v1313_v31 = vadd.f32 %v1281_v17, %v3611_v35 }
 0x1c4   : > { %v2518_v18 = vpop.f32.mrb[20].mxu0  ;;  %v1404_v39 = vadd.f32 1.0, %v2774_v2  ;;  %2779 = vtanh.f32 %v1346_v45  ;;  %v1438_v53 = vmul.f32 %v1406_v20, %v1182_v34 }
 0x1c5   : > { %v1121_v8 = vpop.f32.mrb[21].mxu0  ;;  %2781 = vtanh.f32 %v1344_v10  ;;  %v3637_v25 = vadd.f32 %v2518_v18, %v3418_v48  ;;  %v2776_v16 = vpop.eup %2775  ;;  %v1347_v0 = vmul.f32 0.7978846, %v1315_v56  ;;  %v1345_v44 = vmul.f32 0.7978846, %v1313_v31 }
 0x1c6   : > { %v3640_v14 = vadd.f32 %v3418_v48, %v1121_v8  ;;  %v2519_v29 = vpop.f32.mrb[22].mxu0  ;;  %v2778_v41 = vpop.eup %2777  ;;  %v1407_v26 = vadd.f32 1.0, %v2776_v16  ;;  %v1436_v15 = vmul.f32 %v1404_v39, %v1180_v47  ;;  %v1187_v18 = vmul.f32 0.5, %v3603_v55 }
 0x1c7   : > { %v3645_v21 = vadd.f32 %v2519_v29, %v3418_v48  ;;  %v1124_v32 = vpop.f32.mrb[23].mxu0  ;;  %v1222_v28 = vmul.f32 %v3637_v25, %v3637_v25  ;;  %v1405_v13 = vadd.f32 1.0, %v2778_v41  ;;  %2783 = vtanh.f32 %v1347_v0 }
 0x1c8   : > { %v1220_v37 = vmul.f32 %v3640_v14, %v3640_v14  ;;  %v1439_v49 = vmul.f32 %v1407_v26, %v1183_v59  ;;  %2785 = vtanh.f32 %v1345_v44  ;;  %v3659_v51 = vadd.f32 %v3418_v48, %v1124_v32  ;;  %v3672_v36 = vld [vmem:[#allocation3 + $0x30] sm:$0xff] }
 0x1c9   : > { %v1254_v50 = vmul.f32 %v1222_v28, %v3637_v25  ;;  %v3653_v43 = vld [vmem:[#allocation3 + $0x28] sm:$0xff]  ;;  %v1437_v60 = vmul.f32 %v1405_v13, %v1181_v42  ;;  %v1223_v24 = vmul.f32 %v3645_v21, %v3645_v21  ;;  %v1185_v31 = vmul.f32 0.5, %v3611_v35 }
 0x1ca   : > { %v1252_v63 = vmul.f32 %v1220_v37, %v3640_v14  ;;  %1608 = vrot.lane.b32.xlu1 %v3653_v43, %s2846_s17  ;;  %v1463_v46 = vpack.c.bf16 %v1439_v49, %v1438_v53  ;;  %1562 = vrot.lane.b32.xlu0 %v3653_v43, %s2844_s30  ;;  %v1221_v9 = vmul.f32 %v3659_v51, %v3659_v51 }
 0x1cb   : > { %v1286_v12 = vmul.f32 0.044715, %v1254_v50  ;;  %v1462_v57 = vpack.c.bf16 %v1437_v60, %v1436_v15  ;;  %v1255_v62 = vmul.f32 %v1223_v24, %v3645_v21 }
 0x1cc   : > { %v1284_v54 = vmul.f32 0.044715, %v1252_v63  ;;  %1480 = vst.msk [vmem:[#allocation3 + $0x40] sm:$0xff] %vm305_vm2, %v1463_v46  ;;  %v1253_v45 = vmul.f32 %v1221_v9, %v3659_v51 }
 0x1cd   : > { %v1318_v40 = vadd.f32 %v1286_v12, %v3637_v25  ;;  %1479 = vst.msk [vmem:[#allocation3 + $0x38] sm:$0xff] %vm305_vm2, %v1462_v57  ;;  %v1287_v1 = vmul.f32 0.044715, %v1255_v62  ;;  %v2817_v57 = vld [vmem:[%s2907_s25 + $0x30] sm:$0xff]  }
 0x1ce   : > { %v2780_v6 = vpop.eup %2779  ;;  %v1316_v5 = vadd.f32 %v1284_v54, %v3640_v14  ;;  %1564 = vrot.lane.b32.xlu1 %v3672_v36, %s2844_s30  ;;  %1610 = vrot.lane.b32.xlu0 %v3672_v36, %s2846_s17  ;;  %v1285_v20 = vmul.f32 0.044715, %v1253_v45  ;;  %v2818_v54 = vld [vmem:[%s2907_s25 + $0x38] sm:$0xff]  }
 0x1cf   : > { %v2782_v38 = vpop.eup %2781  ;;  %v1410_v27 = vadd.f32 1.0, %v2780_v6  ;;  %v1350_v7 = vmul.f32 0.7978846, %v1318_v40  ;;  %v2522_v11 = vpop.f32.mrb[24].mxu0  ;;  %v1319_v34 = vadd.f32 %v1287_v1, %v3645_v21  ;;  %2542 = vmatprep.mubr.msk.bf16.mxu0 %vm301_vm0, %v2817_v57 }
 0x1d0   : > { %v1408_v4 = vadd.f32 1.0, %v2782_v38  ;;  %v1348_v2 = vmul.f32 0.7978846, %v1316_v5  ;;  %v3687_v10 = vadd.f32 %v2522_v11, %v3418_v48  ;;  %v1137_v17 = vpop.f32.mrb[25].mxu0  ;;  %v1317_v32 = vadd.f32 %v1285_v20, %v3659_v51  ;;  %2543 = vmatmul.mubr.msk.bf16.gmra.mrb[44].mxu0 %vm301_vm0, %v2818_v54 }
 0x1d1   : > { %2787 = vtanh.f32 %v1350_v7  ;;  %v3691_v30 = vadd.f32 %v3418_v48, %v1137_v17  ;;  %v2523_v39 = vpop.f32.mrb[26].mxu0  ;;  %v2784_v56 = vpop.eup %2783  ;;  %v1442_v8 = vmul.f32 %v1410_v27, %v1186_v19  ;;  %v1351_v29 = vmul.f32 0.7978846, %v1319_v34 }
 0x1d2   : > { %2789 = vtanh.f32 %v1348_v2  ;;  %v1140_v16 = vpop.f32.mrb[27].mxu0  ;;  %v2786_v47 = vpop.eup %2785  ;;  %v1440_v59 = vmul.f32 %v1408_v4, %v1184_v52  ;;  %v1411_v0 = vadd.f32 1.0, %v2784_v56  ;;  %v1226_v55 = vmul.f32 %v3687_v10, %v3687_v10 }
 0x1d3   : > { %v1409_v41 = vadd.f32 1.0, %v2786_v47  ;;  %2791 = vtanh.f32 %v1351_v29  ;;  %v1224_v26 = vmul.f32 %v3691_v30, %v3691_v30  ;;  %v3700_v42 = vadd.f32 %v2523_v39, %v3418_v48  ;;  %v3720_v33 = vld [vmem:[#allocation3 + $0x40] sm:$0xff] }
 0x1d4   : > { %v1443_v35 = vmul.f32 %v1411_v0, %v1187_v18  ;;  %v1349_v44 = vmul.f32 0.7978846, %v1317_v32  ;;  %v1258_v28 = vmul.f32 %v1226_v55, %v3687_v10  ;;  %v3704_v53 = vadd.f32 %v3418_v48, %v1140_v16  ;;  %v3706_v13 = vld [vmem:[#allocation3 + $0x38] sm:$0xff] }
 0x1d5   : > { %v1441_v37 = vmul.f32 %v1409_v41, %v1185_v31  ;;  %v1256_v15 = vmul.f32 %v1224_v26, %v3691_v30  ;;  %v1227_v49 = vmul.f32 %v3700_v42, %v3700_v42  ;;  %1612 = vrot.lane.b32.xlu1 %v3706_v13, %s2846_s17  ;;  %1566 = vrot.lane.b32.xlu0 %v3706_v13, %s2844_s30  ;;  %v1190_v52 = vmul.f32 0.5, %v3637_v25 }
 0x1d6   : > { %v1465_v50 = vpack.c.bf16 %v1443_v35, %v1442_v8  ;;  %2793 = vtanh.f32 %v1349_v44  ;;  %v1290_v60 = vmul.f32 0.044715, %v1258_v28  ;;  %v1225_v12 = vmul.f32 %v3704_v53, %v3704_v53 }
 0x1d7   : > { %v1464_v63 = vpack.c.bf16 %v1441_v37, %v1440_v59  ;;  %v1288_v24 = vmul.f32 0.044715, %v1256_v15  ;;  %v1259_v46 = vmul.f32 %v1227_v49, %v3700_v42  ;;  %v1188_v34 = vmul.f32 0.5, %v3640_v14 }
 0x1d8   : > { %1482 = vst.msk [vmem:[#allocation3 + $0x50] sm:$0xff] %vm305_vm2, %v1465_v50  ;;  %v1322_v3 = vadd.f32 %v1290_v60, %v3687_v10  ;;  %v1257_v9 = vmul.f32 %v1225_v12, %v3704_v53  ;;  %v1191_v39 = vmul.f32 0.5, %v3645_v21  ;;  %v1189_v35 = vmul.f32 0.5, %v3659_v51 }
 0x1d9   : > { %1481 = vst.msk [vmem:[#allocation3 + $0x48] sm:$0xff] %vm305_vm2, %v1464_v63  ;;  %v1320_v62 = vadd.f32 %v1288_v24, %v3691_v30  ;;  %v1291_v40 = vmul.f32 0.044715, %v1259_v46  ;;  %1568 = vrot.lane.b32.xlu1 %v3720_v33, %s2844_s30  ;;  %1614 = vrot.lane.b32.xlu0 %v3720_v33, %s2846_s17 }
 0x1da   : > { %v2526_v6 = vpop.f32.mrb[28].mxu0  ;;  %v1354_v5 = vmul.f32 0.7978846, %v1322_v3  ;;  %v1289_v11 = vmul.f32 0.044715, %v1257_v9 }
 0x1db   : > { %v2788_v19 = vpop.eup %2787  ;;  %v3732_v1 = vadd.f32 %v2526_v6, %v3418_v48  ;;  %v1153_v38 = vpop.f32.mrb[29].mxu0  ;;  %v1352_v7 = vmul.f32 0.7978846, %v1320_v62  ;;  %v1323_v45 = vadd.f32 %v1291_v40, %v3700_v42 }
 0x1dc   : > { %v2790_v27 = vpop.eup %2789  ;;  %v2527_v4 = vpop.f32.mrb[30].mxu0  ;;  %v1414_v2 = vadd.f32 1.0, %v2788_v19  ;;  %2795 = vtanh.f32 %v1354_v5  ;;  %v1321_v56 = vadd.f32 %v1289_v11, %v3704_v53  ;;  %v3745_v16 = vadd.f32 %v3418_v48, %v1153_v38 }
 0x1dd   : > { %v1230_v17 = vmul.f32 %v3732_v1, %v3732_v1  ;;  %v1156_v18 = vpop.f32.mrb[31].mxu0  ;;  %v2792_v20 = vpop.eup %2791  ;;  %2797 = vtanh.f32 %v1352_v7  ;;  %v1355_v25 = vmul.f32 0.7978846, %v1323_v45  ;;  %v1412_v8 = vadd.f32 1.0, %v2790_v27 }
 0x1de   : > { %v1415_v31 = vadd.f32 1.0, %v2792_v20  ;;  %v1353_v14 = vmul.f32 0.7978846, %v1321_v56  ;;  %v3748_v47 = vadd.f32 %v2527_v4, %v3418_v48  ;;  %v3751_v59 = vadd.f32 %v3418_v48, %v1156_v18 }
 0x1df   : > { %v1262_v29 = vmul.f32 %v1230_v17, %v3732_v1  ;;  %2799 = vtanh.f32 %v1355_v25  ;;  %v1446_v0 = vmul.f32 %v1414_v2, %v1190_v52  ;;  %v1228_v41 = vmul.f32 %v3745_v16, %v3745_v16  ;;  %v3770_v46 = vld [vmem:[#allocation3 + $0x50] sm:$0xff] }
 0x1e0   : > { %v2794_v21 = vpop.eup %2793  ;;  %v1447_v32 = vmul.f32 %v1415_v31, %v1191_v39  ;;  %v3755_v26 = vld [vmem:[#allocation3 + $0x48] sm:$0xff]  ;;  %2801 = vtanh.f32 %v1353_v14  ;;  %v1231_v28 = vmul.f32 %v3748_v47, %v3748_v47  ;;  %v1444_v49 = vmul.f32 %v1412_v8, %v1188_v34 }
 0x1e1   : > { %v1294_v55 = vmul.f32 0.044715, %v1262_v29  ;;  %v1413_v44 = vadd.f32 1.0, %v2794_v21  ;;  %1616 = vrot.lane.b32.xlu1 %v3755_v26, %s2846_s17  ;;  %1570 = vrot.lane.b32.xlu0 %v3755_v26, %s2844_s30  ;;  %v1260_v15 = vmul.f32 %v1228_v41, %v3745_v16  ;;  %v1229_v60 = vmul.f32 %v3751_v59, %v3751_v59 }
 0x1e2   : > { %v1467_v48 = vpack.c.bf16 %v1447_v32, %v1446_v0  ;;  %v1263_v51 = vmul.f32 %v1231_v28, %v3748_v47  ;;  %v1194_v27 = vmul.f32 0.5, %v3687_v10  ;;  %v1195_v11 = vmul.f32 0.5, %v3700_v42 }
 0x1e3   : > { %v1326_v37 = vadd.f32 %v1294_v55, %v3732_v1  ;;  %v1445_v50 = vmul.f32 %v1413_v44, %v1189_v35  ;;  %v1292_v24 = vmul.f32 0.044715, %v1260_v15  ;;  %v1261_v57 = vmul.f32 %v1229_v60, %v3751_v59 }
 0x1e4   : > { %1484 = vst.msk [vmem:[#allocation3 + $0x60] sm:$0xff] %vm305_vm2, %v1467_v48  ;;  %v1295_v3 = vmul.f32 0.044715, %v1263_v51  ;;  %v1192_v34 = vmul.f32 0.5, %v3691_v30  ;;  %v1193_v39 = vmul.f32 0.5, %v3704_v53  ;;  %v1198_v0 = vmul.f32 0.5, %v3732_v1 }
 0x1e5   : > { %v1358_v63 = vmul.f32 0.7978846, %v1326_v37  ;;  %v1466_v12 = vpack.c.bf16 %v1445_v50, %v1444_v49  ;;  %1572 = vrot.lane.b32.xlu1 %v3770_v46, %s2844_s30  ;;  %1618 = vrot.lane.b32.xlu0 %v3770_v46, %s2846_s17  ;;  %v1324_v62 = vadd.f32 %v1292_v24, %v3745_v16  ;;  %v1293_v6 = vmul.f32 0.044715, %v1261_v57 }
 0x1e6   : > { %v2796_v54 = vpop.eup %2795  ;;  %v1327_v9 = vadd.f32 %v1295_v3, %v3748_v47  ;;  %v1199_v55 = vmul.f32 0.5, %v3748_v47  ;;  %v1196_v44 = vmul.f32 0.5, %v3745_v16  ;;  %v1197_v37 = vmul.f32 0.5, %v3751_v59 }
 0x1e7   : > { %v2798_v40 = vpop.eup %2797  ;;  %1483 = vst.msk [vmem:[#allocation3 + $0x58] sm:$0xff] %vm305_vm2, %v1466_v12  ;;  %2803 = vtanh.f32 %v1358_v63  ;;  %v1418_v19 = vadd.f32 1.0, %v2796_v54  ;;  %v1356_v5 = vmul.f32 0.7978846, %v1324_v62  ;;  %v1325_v7 = vadd.f32 %v1293_v6, %v3751_v59  ;;  %v1537_v63 = vld [vmem:[#allocation3 + $0x88] sm:$0xff]  ;;  %v1489_v12 = vld [vmem:[#allocation3] sm:$0xff] }
 0x1e8   : > { %v1359_v52 = vmul.f32 0.7978846, %v1327_v9  ;;  %v1416_v45 = vadd.f32 1.0, %v2798_v40 }
 0x1e9   : > { %v2800_v38 = vpop.eup %2799  ;;  %2805 = vtanh.f32 %v1356_v5  ;;  %v1357_v17 = vmul.f32 0.7978846, %v1325_v7  ;;  %v1450_v18 = vmul.f32 %v1418_v19, %v1194_v27 }
 0x1ea   : > { %v1419_v4 = vadd.f32 1.0, %v2800_v38  ;;  %v2802_v2 = vpop.eup %2801  ;;  %2807 = vtanh.f32 %v1359_v52  ;;  %v1448_v10 = vmul.f32 %v1416_v45, %v1192_v34 }
 0x1eb   : > { %v1417_v25 = vadd.f32 1.0, %v2802_v2  ;;  %2809 = vtanh.f32 %v1357_v17  ;;  %v3793_v53 = vld [vmem:[#allocation3 + $0x60] sm:$0xff] }
 0x1ec   : > { %v1451_v20 = vmul.f32 %v1419_v4, %v1195_v11 }
 0x1ed   : > { %v1449_v8 = vmul.f32 %v1417_v25, %v1193_v39 }
 0x1ee   : > { %v1469_v56 = vpack.c.bf16 %v1451_v20, %v1450_v18  ;;  %v3785_v31 = vld [vmem:[#allocation3 + $0x58] sm:$0xff] }
 0x1ef   : > { %1620 = vrot.lane.b32.xlu1 %v3785_v31, %s2846_s17  ;;  %1574 = vrot.lane.b32.xlu0 %v3785_v31, %s2844_s30  ;;  %v1468_v30 = vpack.c.bf16 %v1449_v8, %v1448_v10 }
 0x1f0   : > { %1486 = vst.msk [vmem:[#allocation3 + $0x70] sm:$0xff] %vm305_vm2, %v1469_v56 }
 0x1f1   : > { %v2804_v42 = vpop.eup %2803  ;;  %1485 = vst.msk [vmem:[#allocation3 + $0x68] sm:$0xff] %vm305_vm2, %v1468_v30 }
 0x1f2   : > { %v1422_v14 = vadd.f32 1.0, %v2804_v42 }
 0x1f3   : > { %1576 = vrot.lane.b32.xlu1 %v3793_v53, %s2844_s30  ;;  %1622 = vrot.lane.b32.xlu0 %v3793_v53, %s2846_s17  ;;  %v2806_v29 = vpop.eup %2805 }
 0x1f4   : > { %v2808_v21 = vpop.eup %2807  ;;  %v1420_v32 = vadd.f32 1.0, %v2806_v29  ;;  %v1454_v28 = vmul.f32 %v1422_v14, %v1198_v0 }
 0x1f5   : > { %v1423_v41 = vadd.f32 1.0, %v2808_v21  ;;  %v2810_v35 = vpop.eup %2809 }
 0x1f6   : > { %v1421_v15 = vadd.f32 1.0, %v2810_v35  ;;  %v1452_v50 = vmul.f32 %v1420_v32, %v1196_v44 }
 0x1f7   : > { %v1455_v48 = vmul.f32 %v1423_v41, %v1199_v55  ;;  %v3810_v16 = vld [vmem:[#allocation3 + $0x70] sm:$0xff] }
 0x1f8   : > { %v3803_v49 = vld [vmem:[#allocation3 + $0x68] sm:$0xff]  ;;  %v1453_v60 = vmul.f32 %v1421_v15, %v1197_v37 }
 0x1f9   : > { %v1471_v51 = vpack.c.bf16 %v1455_v48, %v1454_v28  ;;  %1624 = vrot.lane.b32.xlu1 %v3803_v49, %s2846_s17  ;;  %1578 = vrot.lane.b32.xlu0 %v3803_v49, %s2844_s30 }
 0x1fa   : > { %v1470_v1 = vpack.c.bf16 %v1453_v60, %v1452_v50 }
 0x1fb   : > { %1488 = vst.msk [vmem:[#allocation3 + $0x80] sm:$0xff] %vm305_vm2, %v1471_v51 }
 0x1fc   : > { %1487 = vst.msk [vmem:[#allocation3 + $0x78] sm:$0xff] %vm305_vm2, %v1470_v1 }
 0x1fd   : > { %1580 = vrot.lane.b32.xlu1 %v3810_v16, %s2844_s30  ;;  %1626 = vrot.lane.b32.xlu0 %v3810_v16, %s2846_s17 }
 0x202   : > { %v1520_v59 = vld [vmem:[#allocation3 + $0x80] sm:$0xff] }
 0x203   : > { %v3817_v47 = vld [vmem:[#allocation3 + $0x78] sm:$0xff] }
 0x204   : > { %1628 = vrot.lane.b32.xlu1 %v3817_v47, %s2846_s17  ;;  %1582 = vrot.lane.b32.xlu0 %v3817_v47, %s2844_s30 }
 0x208   : > { %1584 = vrot.lane.b32.xlu1 %v1520_v59, %s2844_s30  ;;  %1630 = vrot.lane.b32.xlu0 %v1520_v59, %s2846_s17 }
 0x20c   : > { %1632 = vrot.lane.b32.xlu1 %v1537_v63, %s2846_s17 }
 0x224   : > { %v1557_v62 = vpop.permute.xlu1 %1556 }
 0x225   : > { %v1555_v24 = vpop.permute.xlu0 %1554  ;;  %v1639_v40 = vsel %vm305_vm2, %v3562_v61, %v1557_v62 }
 0x226   : > { %v1636_v3 = vsel %vm305_vm2, %v1489_v12, %v1555_v24 }
 0x229   : > { %v1603_v57 = vpop.permute.xlu0 %1602 }
 0x22a   : > { %v1684_v54 = vsel %vm1682_vm6, %v1636_v3, %v1603_v57 }
 0x22b   : > { %2566 = vmatprep.mubr.msk.bf16.mxu1 %vm2021_vm7, %v1684_v54 }
 0x22e   : > { %v1605_v9 = vpop.permute.xlu1 %1604  ;;  %v1559_v6 = vpop.permute.xlu0 %1558 }
 0x22f   : > { %v1686_v19 = vsel %vm1682_vm6, %v1639_v40, %v1605_v9  ;;  %v1642_v5 = vsel %vm305_vm2, %v3552_v23, %v1559_v6 }
 0x230   : > { %2567 = vmatmul.mubr.msk.bf16.vlgmr.msra.gmra.mrb[16].mxu1 %vm2021_vm7, %v1686_v19 }
 0x232   : > { %v1607_v38 = vpop.permute.xlu0 %1606  ;;  %v1561_v52 = vpop.permute.xlu1 %1560 }
 0x233   : > { %v1688_v27 = vsel %vm1682_vm6, %v1642_v5, %v1607_v38  ;;  %v1645_v7 = vsel %vm305_vm2, %v3599_v22, %v1561_v52 }
 0x234   : > { %2570 = vmatprep.mubr.msk.bf16.mxu1 %vm2021_vm7, %v1688_v27 }
 0x23c   : > { %v1609_v45 = vpop.permute.xlu1 %1608  ;;  %v1563_v11 = vpop.permute.xlu0 %1562 }
 0x23d   : > { %v1690_v61 = vsel %vm1682_vm6, %v1645_v7, %v1609_v45  ;;  %v1648_v4 = vsel %vm305_vm2, %v3617_v58, %v1563_v11 }
 0x23e   : > { %2571 = vmatmul.mubr.msk.bf16.gmra.mrb[20].mxu1 %vm2021_vm7, %v1690_v61 }
 0x240   : > { %v1611_v2 = vpop.permute.xlu0 %1610  ;;  %v1565_v23 = vpop.permute.xlu1 %1564 }
 0x241   : > { %v1692_v34 = vsel %vm1682_vm6, %v1648_v4, %v1611_v2  ;;  %v1651_v17 = vsel %vm305_vm2, %v3653_v43, %v1565_v23 }
 0x242   : > { %2574 = vmatprep.mubr.msk.bf16.mxu1 %vm2021_vm7, %v1692_v34 }
 0x247   : > { %v1613_v18 = vpop.permute.xlu1 %1612  ;;  %v1567_v22 = vpop.permute.xlu0 %1566 }
 0x248   : > { %v1694_v20 = vsel %vm1682_vm6, %v1651_v17, %v1613_v18  ;;  %v1654_v39 = vsel %vm305_vm2, %v3672_v36, %v1567_v22  ;;  %v3892_v17 = vld [vmem:[%s3959_s1 + $0x3] ss:$0 sm:$0xff] }
 0x249   : > { %2575 = vmatmul.mubr.msk.bf16.gmra.mrb[24].mxu1 %vm2021_vm7, %v1694_v20 }
 0x24b   : > { %v1615_v25 = vpop.permute.xlu0 %1614  ;;  %v1569_v10 = vpop.permute.xlu1 %1568 }
 0x24c   : > { %v1696_v58 = vsel %vm1682_vm6, %v1654_v39, %v1615_v25  ;;  %v1657_v56 = vsel %vm305_vm2, %v3706_v13, %v1569_v10 }
 0x24d   : > { %2578 = vmatprep.mubr.msk.bf16.mxu1 %vm2021_vm7, %v1696_v58 }
 0x253   : > { %v1617_v8 = vpop.permute.xlu1 %1616  ;;  %v1571_v43 = vpop.permute.xlu0 %1570 }
 0x254   : > { %v1698_v30 = vsel %vm1682_vm6, %v1657_v56, %v1617_v8  ;;  %v1660_v42 = vsel %vm305_vm2, %v3720_v33, %v1571_v43 }
 0x255   : > { %2579 = vmatmul.mubr.msk.bf16.gmra.mrb[28].mxu1 %vm2021_vm7, %v1698_v30 }
 0x257   : > { %v1619_v29 = vpop.permute.xlu0 %1618  ;;  %v1573_v14 = vpop.permute.xlu1 %1572 }
 0x258   : > { %v1700_v36 = vsel %vm1682_vm6, %v1660_v42, %v1619_v29  ;;  %v1663_v21 = vsel %vm305_vm2, %v3755_v26, %v1573_v14 }
 0x259   : > { %2582 = vmatprep.mubr.msk.bf16.mxu1 %vm2021_vm7, %v1700_v36 }
 0x261   : > { %v1621_v0 = vpop.permute.xlu1 %1620  ;;  %v1575_v13 = vpop.permute.xlu0 %1574 }
 0x262   : > { %v1702_v32 = vsel %vm1682_vm6, %v1663_v21, %v1621_v0  ;;  %v1666_v55 = vsel %vm305_vm2, %v3770_v46, %v1575_v13 }
 0x263   : > { %2583 = vmatmul.mubr.msk.bf16.gmra.mrb[0].mxu1 %vm2021_vm7, %v1702_v32 }
 0x265   : > { %v1623_v41 = vpop.permute.xlu0 %1622  ;;  %v1577_v33 = vpop.permute.xlu1 %1576 }
 0x266   : > { %v1704_v35 = vsel %vm1682_vm6, %v1666_v55, %v1623_v41  ;;  %v1669_v44 = vsel %vm305_vm2, %v3785_v31, %v1577_v33 }
 0x267   : > { %2586 = vmatprep.mubr.msk.bf16.mxu1 %vm2021_vm7, %v1704_v35 }
 0x26b   : > { %v1625_v28 = vpop.permute.xlu1 %1624  ;;  %v1579_v26 = vpop.permute.xlu0 %1578 }
 0x26c   : > { %v1706_v48 = vsel %vm1682_vm6, %v1669_v44, %v1625_v28  ;;  %v1672_v37 = vsel %vm305_vm2, %v3793_v53, %v1579_v26 }
 0x26d   : > { %2587 = vmatmul.mubr.msk.bf16.gmra.mrb[4].mxu1 %vm2021_vm7, %v1706_v48 }
 0x26f   : > { %v1627_v15 = vpop.permute.xlu0 %1626  ;;  %v1581_v50 = vpop.permute.xlu1 %1580 }
 0x270   : > { %v1708_v46 = vsel %vm1682_vm6, %v1672_v37, %v1627_v15  ;;  %v1675_v51 = vsel %vm305_vm2, %v3803_v49, %v1581_v50 }
 0x271   : > { %2590 = vmatprep.mubr.msk.bf16.mxu1 %vm2021_vm7, %v1708_v46 }
 0x276   : > { %v1629_v60 = vpop.permute.xlu1 %1628  ;;  %v1583_v31 = vpop.permute.xlu0 %1582 }
 0x277   : > { %v1710_v1 = vsel %vm1682_vm6, %v1675_v51, %v1629_v60  ;;  %v1678_v59 = vsel %vm305_vm2, %v3810_v16, %v1583_v31 }
 0x278   : > { %2591 = vmatmul.mubr.msk.bf16.gmra.mrb[8].mxu1 %vm2021_vm7, %v1710_v1 }
 0x27a   : > { %v1585_v63 = vpop.permute.xlu1 %1584  ;;  %v1631_v53 = vpop.permute.xlu0 %1630 }
 0x27b   : > { %v1712_v24 = vsel %vm1682_vm6, %v1678_v59, %v1631_v53  ;;  %v1681_v12 = vsel %vm305_vm2, %v3817_v47, %v1585_v63  ;;  %v2532_v57 = vpop.f32.mrb[32].mxu0 }
 0x27c   : > { %2594 = vmatprep.mubr.msk.bf16.mxu1 %vm2021_vm7, %v1712_v24  ;;  %v1885_v54 = vpop.f32.mrb[33].mxu0 }
 0x27d   : > { %v2533_v62 = vpop.f32.mrb[34].mxu0 }
 0x27e   : > { %v1633_v3 = vpop.permute.xlu1 %1632  ;;  %v1888_v40 = vpop.f32.mrb[35].mxu0 }
 0x27f   : > { %v1714_v49 = vsel %vm1682_vm6, %v1681_v12, %v1633_v3 }
 0x280   : > { %2595 = vmatmul.mubr.msk.bf16.gmra.mrb[12].mxu1 %vm2021_vm7, %v1714_v49 }
 0x289   : > { %v2536_v9 = vpop.f32.mrb[36].mxu0 }
 0x28a   : > { %v1901_v16 = vpop.f32.mrb[37].mxu0 }
 0x28b   : > { %v2537_v6 = vpop.f32.mrb[38].mxu0 }
 0x28c   : > { %v1904_v19 = vpop.f32.mrb[39].mxu0 }
 0x295   : > { %v2540_v5 = vpop.f32.mrb[40].mxu0 }
 0x296   : > { %v1917_v38 = vpop.f32.mrb[41].mxu0 }
 0x297   : > { %v2541_v27 = vpop.f32.mrb[42].mxu0 }
 0x298   : > { %v1920_v52 = vpop.f32.mrb[43].mxu0 }
 0x2a3   : > { %v2544_v7 = vpop.f32.mrb[44].mxu0 }
 0x2a4   : > { %v1933_v47 = vpop.f32.mrb[45].mxu0 }
 0x2a5   : > { %v2545_v45 = vpop.f32.mrb[46].mxu0 }
 0x2a6   : > { %v1936_v61 = vpop.f32.mrb[47].mxu0 }
 0x303   : > { %v2568_v11 = vpop.f32.mrb[16].mxu1 }
 0x304   : > { %v2101_v4 = vadd.f32 %v2568_v11, %v2532_v57  ;;  %v2092_v2 = vpop.f32.mrb[17].mxu1 }
 0x305   : > { %v2093_v23 = vadd.f32 %v2092_v2, %v1885_v54  ;;  %v2569_v34 = vpop.f32.mrb[18].mxu1 }
 0x306   : > { %v2104_v18 = vadd.f32 %v2569_v34, %v2533_v62  ;;  %v2095_v22 = vpop.f32.mrb[19].mxu1 }
 0x307   : > { %v2219_v20 = vadd.f32 %v2101_v4, %v2093_v23  ;;  %v2096_v39 = vadd.f32 %v2095_v22, %v1888_v40 }
 0x309   : > { %v2239_v25 = vadd.f32 %v3892_v17, %v2219_v20  ;;  %v2220_v58 = vadd.f32 %v2104_v18, %v2096_v39 }
 0x30b   : > { %2255 = vst.msk [vmem:[%s3899_s27] sm:$0xff] %vm305_vm2, %v2239_v25  ;;  %v2240_v10 = vadd.f32 %v3892_v17, %v2220_v58 }
 0x30d   : > { %2256 = vst.msk [vmem:[%s3899_s27 + $0x8] sm:$0xff] %vm305_vm2, %v2240_v10 }
 0x311   : > { %v2572_v56 = vpop.f32.mrb[20].mxu1 }
 0x312   : > { %v2117_v8 = vadd.f32 %v2572_v56, %v2536_v9  ;;  %v2108_v43 = vpop.f32.mrb[21].mxu1 }
 0x313   : > { %v2109_v30 = vadd.f32 %v2108_v43, %v1901_v16  ;;  %v2573_v42 = vpop.f32.mrb[22].mxu1 }
 0x314   : > { %v2120_v29 = vadd.f32 %v2573_v42, %v2537_v6  ;;  %v2111_v36 = vpop.f32.mrb[23].mxu1 }
 0x315   : > { %v2221_v14 = vadd.f32 %v2117_v8, %v2109_v30  ;;  %v2112_v21 = vadd.f32 %v2111_v36, %v1904_v19 }
 0x317   : > { %v2241_v0 = vadd.f32 %v3892_v17, %v2221_v14  ;;  %v2222_v13 = vadd.f32 %v2120_v29, %v2112_v21 }
 0x319   : > { %2257 = vst.msk [vmem:[%s3899_s27 + $0x10] sm:$0xff] %vm305_vm2, %v2241_v0  ;;  %v2242_v32 = vadd.f32 %v3892_v17, %v2222_v13 }
 0x31b   : > { %2258 = vst.msk [vmem:[%s3899_s27 + $0x18] sm:$0xff] %vm305_vm2, %v2242_v32 }
 0x31c   : > { %v2576_v55 = vpop.f32.mrb[24].mxu1 }
 0x31d   : > { %v2133_v41 = vadd.f32 %v2576_v55, %v2540_v5  ;;  %v2124_v33 = vpop.f32.mrb[25].mxu1 }
 0x31e   : > { %v2125_v35 = vadd.f32 %v2124_v33, %v1917_v38  ;;  %v2577_v44 = vpop.f32.mrb[26].mxu1 }
 0x31f   : > { %v2136_v28 = vadd.f32 %v2577_v44, %v2541_v27  ;;  %v2127_v26 = vpop.f32.mrb[27].mxu1 }
 0x320   : > { %v2223_v48 = vadd.f32 %v2133_v41, %v2125_v35  ;;  %v2128_v37 = vadd.f32 %v2127_v26, %v1920_v52 }
 0x322   : > { %v2243_v15 = vadd.f32 %v3892_v17, %v2223_v48  ;;  %v2224_v46 = vadd.f32 %v2136_v28, %v2128_v37 }
 0x324   : > { %2259 = vst.msk [vmem:[%s3899_s27 + $0x20] sm:$0xff] %vm305_vm2, %v2243_v15  ;;  %v2244_v50 = vadd.f32 %v3892_v17, %v2224_v46 }
 0x326   : > { %2260 = vst.msk [vmem:[%s3899_s27 + $0x28] sm:$0xff] %vm305_vm2, %v2244_v50 }
 0x328   : > { %v2580_v51 = vpop.f32.mrb[28].mxu1 }
 0x329   : > { %v2149_v60 = vadd.f32 %v2580_v51, %v2544_v7  ;;  %v2140_v31 = vpop.f32.mrb[29].mxu1 }
 0x32a   : > { %v2141_v1 = vadd.f32 %v2140_v31, %v1933_v47  ;;  %v2581_v59 = vpop.f32.mrb[30].mxu1 }
 0x32b   : > { %v2152_v63 = vadd.f32 %v2581_v59, %v2545_v45  ;;  %v2143_v53 = vpop.f32.mrb[31].mxu1 }
 0x32c   : > { %v2225_v24 = vadd.f32 %v2149_v60, %v2141_v1  ;;  %v2144_v12 = vadd.f32 %v2143_v53, %v1936_v61 }
 0x32e   : > { %v2245_v3 = vadd.f32 %v3892_v17, %v2225_v24  ;;  %v2226_v49 = vadd.f32 %v2152_v63, %v2144_v12 }
 0x330   : > { %2261 = vst.msk [vmem:[%s3899_s27 + $0x30] sm:$0xff] %vm305_vm2, %v2245_v3  ;;  %v2246_v57 = vadd.f32 %v3892_v17, %v2226_v49 }
 0x332   : > { %2262 = vst.msk [vmem:[%s3899_s27 + $0x38] sm:$0xff] %vm305_vm2, %v2246_v57 }
 0x336   : > { %v2584_v54 = vpop.f32.mrb[0].mxu1 }
 0x337   : > { %v2156_v62 = vpop.f32.mrb[1].mxu1 }
 0x338   : > { %v2227_v40 = vadd.f32 %v2584_v54, %v2156_v62  ;;  %v2585_v9 = vpop.f32.mrb[2].mxu1 }
 0x339   : > { %v2159_v16 = vpop.f32.mrb[3].mxu1 }
 0x33a   : > { %v2247_v6 = vadd.f32 %v3892_v17, %v2227_v40  ;;  %v2228_v19 = vadd.f32 %v2585_v9, %v2159_v16 }
 0x33c   : > { %2263 = vst.msk [vmem:[%s3899_s27 + $0x40] sm:$0xff] %vm305_vm2, %v2247_v6  ;;  %v2248_v5 = vadd.f32 %v3892_v17, %v2228_v19 }
 0x33e   : > { %2264 = vst.msk [vmem:[%s3899_s27 + $0x48] sm:$0xff] %vm305_vm2, %v2248_v5 }
 0x340   : > { %v2588_v38 = vpop.f32.mrb[4].mxu1 }
 0x341   : > { %v2172_v27 = vpop.f32.mrb[5].mxu1 }
 0x342   : > { %v2229_v52 = vadd.f32 %v2588_v38, %v2172_v27  ;;  %v2589_v7 = vpop.f32.mrb[6].mxu1 }
 0x343   : > { %v2175_v47 = vpop.f32.mrb[7].mxu1 }
 0x344   : > { %v2249_v45 = vadd.f32 %v3892_v17, %v2229_v52  ;;  %v2230_v61 = vadd.f32 %v2589_v7, %v2175_v47 }
 0x346   : > { %2265 = vst.msk [vmem:[%s3899_s27 + $0x50] sm:$0xff] %vm305_vm2, %v2249_v45  ;;  %v2250_v11 = vadd.f32 %v3892_v17, %v2230_v61 }
 0x348   : > { %2266 = vst.msk [vmem:[%s3899_s27 + $0x58] sm:$0xff] %vm305_vm2, %v2250_v11 }
 0x34b   : > { %v2592_v4 = vpop.f32.mrb[8].mxu1 }
 0x34c   : > { %v2188_v2 = vpop.f32.mrb[9].mxu1 }
 0x34d   : > { %v2231_v23 = vadd.f32 %v2592_v4, %v2188_v2  ;;  %v2593_v34 = vpop.f32.mrb[10].mxu1 }
 0x34e   : > { %v2191_v18 = vpop.f32.mrb[11].mxu1 }
 0x34f   : > { %v2251_v22 = vadd.f32 %v3892_v17, %v2231_v23  ;;  %v2232_v20 = vadd.f32 %v2593_v34, %v2191_v18 }
 0x351   : > { %2267 = vst.msk [vmem:[%s3899_s27 + $0x60] sm:$0xff] %vm305_vm2, %v2251_v22  ;;  %v2252_v39 = vadd.f32 %v3892_v17, %v2232_v20 }
 0x353   : > { %2268 = vst.msk [vmem:[%s3899_s27 + $0x68] sm:$0xff] %vm305_vm2, %v2252_v39  ;;  %v2596_v25 = vpop.f32.mrb[12].mxu1 }
 0x354   : > { %v2204_v58 = vpop.f32.mrb[13].mxu1 }
 0x355   : > { %v2233_v10 = vadd.f32 %v2596_v25, %v2204_v58  ;;  %v2597_v56 = vpop.f32.mrb[14].mxu1 }
 0x356   : > { %v2207_v8 = vpop.f32.mrb[15].mxu1 }
 0x357   : > { %v2253_v43 = vadd.f32 %v3892_v17, %v2233_v10  ;;  %v2234_v30 = vadd.f32 %v2597_v56, %v2207_v8 }
 0x359   : > { %2269 = vst.msk [vmem:[%s3899_s27 + $0x70] sm:$0xff] %vm305_vm2, %v2253_v43  ;;  %v2254_v42 = vadd.f32 %v3892_v17, %v2234_v30 }
 0x35b   : > { %2270 = vst.msk [vmem:[%s3899_s27 + $0x78] sm:$0xff] %vm305_vm2, %v2254_v42 }
 0x35c PF: > { %s15_s20 = sadd.s32 1, %s2841_s20   ;;  %s3964_s18 = smov %s2837_s19 }
 0x35d   : > { %p12_p5 = scmp.ge.s32.totalorder %s15_s20, 4   ;;  %s3965_s19 = smov %s3967_s21 }
 0x35f   :  { %14 = sbr.rel (!%p12_p5) target bundleno = 2 (0x2), region = 76 }

</bundles_post_ra>
